<compile_context>
chip_gen: v7x
topology: tpu7x:2x2x1
jax: 0.10.0
libtpu: 0.0.40
codegen_flags: <defaults>
</compile_context>

<pallas_src>
import math
import functools

import jax
import jax.numpy as jnp
from jax.experimental import pallas as pl
from jax.experimental.pallas import tpu as pltpu


def _round_up(x, m):
    return (x + m - 1) // m * m


def _gelu_exact(x):
    # PyTorch F.gelu default: 0.5 * x * (1 + erf(x / sqrt(2)))
    return 0.5 * x * (1.0 + jax.lax.erf(x * (1.0 / math.sqrt(2.0))))


def _fused_convblock_kernel(x_ref, w1_ref, g1_ref, be1_ref,
                            w2_ref, g2_ref, be2_ref, mask_ref,
                            o_ref, p1_ref, p2_ref, *, k, p, wp, count, eps):
    # Shapes (channel-major, pixel axis on lanes, everything tile-aligned):
    #   x_ref   : (Cin_p , Mp_pad)  spatially padded, flattened, zero lane/channel pad
    #   w1_ref  : (Chid_p, K*K*Cin_p)   conv1 weights, tap-major columns
    #   w2_ref  : (Cout_p, K*K*Chid_p)  conv2 weights
    #   g*/be*  : (C, 1)                BN affine
    #   mask_ref: (1, Mp_pad)  1.0 at real interior pixels, 0.0 elsewhere
    #   o_ref   : (Cout_p, Mp_pad)
    #   p1_ref  : (K*K*Cin_p , Mp_pad)  VMEM patch slab for conv1
    #   p2_ref  : (K*K*Chid_p, Mp_pad)  VMEM patch slab for conv2
    cin_p = x_ref.shape[0]
    chid_p = w1_ref.shape[0]
    mp_pad = o_ref.shape[1]
    inv_count = 1.0 / count

    maskb = mask_ref[...] > 0.5                      # interior-pixel predicate (1, Mp_pad)
    taps = [(kh - p) * wp + (kw - p) for kh in range(k) for kw in range(k)]

    def stage_taps(patch_ref, src, c):
        # patch[t*c + i, q] = src[i, (q + off_t) mod Mp_pad]  -- manual lane roll.
        # For every *interior* pixel q the un-wrapped value is read; wrapped /
        # padded lanes only ever land on masked (don't-care) output pixels.
        for t, off in enumerate(taps):
            rows = pl.ds(t * c, c)
            if off == 0:
                patch_ref[rows, :] = src
            elif off > 0:
                patch_ref[rows, pl.ds(0, mp_pad - off)] = src[:, off:]
                patch_ref[rows, pl.ds(mp_pad - off, off)] = src[:, :off]   # wrap-fill (finite)
            else:
                patch_ref[rows, pl.ds(-off, mp_pad + off)] = src[:, : mp_pad + off]
                patch_ref[rows, pl.ds(0, -off)] = src[:, mp_pad + off:]    # wrap-fill (finite)

    def bn_gelu(z, g, be):
        # Training-mode BN over interior pixels only (masked, biased variance),
        # single select reused for sum and sum-of-squares, then exact-erf GELU.
        zm = jnp.where(maskb, z, 0.0)
        s = jnp.sum(zm, axis=1, keepdims=True)
        ss = jnp.sum(zm * zm, axis=1, keepdims=True)
        mean = s * inv_count
        var = ss * inv_count - mean * mean           # single-pass; fine at 1e-3 tol
        zn = (z - mean) * jax.lax.rsqrt(var + eps) * g + be
        return _gelu_exact(zn)

    # ---- conv1 (one dot over the staged (K*K*Cin, Mp) slab) + bn1 + gelu ----
    stage_taps(p1_ref, x_ref[...], cin_p)
    z1 = jnp.dot(w1_ref[...], p1_ref[...], preferred_element_type=jnp.float32)
    # conv1 bias omitted: per-channel constant cancels exactly in training-mode BN.
    h1 = jnp.where(maskb, bn_gelu(z1, g1_ref[...], be1_ref[...]), 0.0)
    # zeros at padding pixels == conv2 'same' zero padding

    # ---- conv2 + bn2 + gelu ----
    stage_taps(p2_ref, h1, chid_p)
    z2 = jnp.dot(w2_ref[...], p2_ref[...], preferred_element_type=jnp.float32)
    o_ref[...] = bn_gelu(z2, g2_ref[...], be2_ref[...]).astype(o_ref.dtype)
    # non-interior output lanes hold finite don't-care values; wrapper slices them off


def _pick_vmem_limit(resident_bytes):
    # Re-derive the budget per generation (v7x: 64 MiB physical vs 128 MiB v5e/v6e)
    # instead of a hard-coded limit.
    cap = 64 * 1024 * 1024
    try:
        cap = int(getattr(pltpu.get_tpu_info(), "vmem_capacity_bytes", cap))
    except Exception:
        pass
    want = max(4 * int(resident_bytes), 32 * 1024 * 1024)
    return int(min(want, cap * 3 // 4))


def conv_block_ablation_forward(x_nchw, params, *, eps=1e-5):
    # External API: NCHW in / NCHW out (PyTorch convention).
    n, cin, h, w = x_nchw.shape
    w1 = params["w1"]                                  # (Chid, Cin, K, K)  OIHW
    w2 = params["w2"]                                  # (Cout, Chid, K, K)
    chid, _, k, _ = w1.shape
    cout = w2.shape[0]
    p = k // 2
    hp, wp = h + 2 * p, w + 2 * p
    mp = n * hp * wp
    m = n * h * w

    # Tile-aligned sizes: pixel axis -> multiple of 128 lanes, channels -> multiple of 8.
    mp_pad = _round_up(mp, 128)
    cin_p = _round_up(cin, 8)
    chid_p = _round_up(chid, 8)
    cout_p = _round_up(cout, 8)
    kk = k * k

    # ---- wrapper-side layout plumbing (cheap; no HBM im2col amplification) ----
    xc = jnp.transpose(x_nchw, (1, 0, 2, 3))                             # (Cin, N, H, W)
    xc = jnp.pad(xc, ((0, cin_p - cin), (0, 0), (p, p), (p, p)))         # (Cin_p, N, Hp, Wp)
    x2d = jnp.pad(xc.reshape(cin_p, mp), ((0, 0), (0, mp_pad - mp)))     # (Cin_p, Mp_pad)

    # Interior-pixel mask over the padded flattened pixel axis (tiny input; kept
    # as an HBM input to avoid in-kernel integer div/mod lowering).
    row = jnp.arange(hp)
    col = jnp.arange(wp)
    m2d = (((row >= p) & (row < p + h))[:, None]
           & ((col >= p) & (col < p + w))[None, :])                      # (Hp, Wp)
    mask = jnp.tile(m2d.reshape(-1), (n,))
    mask = jnp.pad(mask, (0, mp_pad - mp)).reshape(1, mp_pad).astype(jnp.float32)

    # Conv weights -> single-dot matrices, tap-major columns (tap t = kh*K + kw).
    w1_p = jnp.pad(w1, ((0, chid_p - chid), (0, cin_p - cin), (0, 0), (0, 0)))
    w1m = jnp.transpose(w1_p, (0, 2, 3, 1)).reshape(chid_p, kk * cin_p)
    w2_p = jnp.pad(w2, ((0, cout_p - cout), (0, chid_p - chid), (0, 0), (0, 0)))
    w2m = jnp.transpose(w2_p, (0, 2, 3, 1)).reshape(cout_p, kk * chid_p)

    g1 = jnp.pad(params["g1"], (0, chid_p - chid), constant_values=1.0).reshape(chid_p, 1)
    be1 = jnp.pad(params["be1"], (0, chid_p - chid)).reshape(chid_p, 1)
    g2 = jnp.pad(params["g2"], (0, cout_p - cout), constant_values=1.0).reshape(cout_p, 1)
    be2 = jnp.pad(params["be2"], (0, cout_p - cout)).reshape(cout_p, 1)
    # params["b1"], params["b2"] intentionally unused: pre-BN bias cancels exactly
    # under training-mode batch statistics.

    flops = (2 * mp_pad * kk * (cin_p * chid_p + chid_p * cout_p)
             + 12 * mp_pad * (chid_p + cout_p))
    transcendentals = mp_pad * (chid_p + cout_p)
    bytes_accessed = 4 * (x2d.size + w1m.size + w2m.size + mask.size
                          + cout_p * mp_pad + 2 * (chid_p + cout_p))
    resident = 4 * mp_pad * (cin_p + cout_p + kk * (cin_p + chid_p) + 4 * chid_p)

    vmem = pl.BlockSpec(memory_space=pltpu.MemorySpace.VMEM)
    out2d = pl.pallas_call(
        functools.partial(_fused_convblock_kernel,
                          k=k, p=p, wp=wp, count=float(m), eps=eps),
        out_shape=jax.ShapeDtypeStruct((cout_p, mp_pad), jnp.float32),
        in_specs=[vmem] * 8,
        out_specs=vmem,
        scratch_shapes=[pltpu.VMEM((kk * cin_p, mp_pad), jnp.float32),
                        pltpu.VMEM((kk * chid_p, mp_pad), jnp.float32)],
        compiler_params=pltpu.CompilerParams(
            vmem_limit_bytes=_pick_vmem_limit(resident)),
        cost_estimate=pl.CostEstimate(flops=int(flops),
                                      transcendentals=int(transcendentals),
                                      bytes_accessed=int(bytes_accessed)),
    )(x2d, w1m, g1, be1, w2m, g2, be2, mask)

    # (Cout_p, Mp_pad) -> NCHW interior.
    out = out2d[:cout, :mp].reshape(cout, n, hp, wp)[:, :, p:p + h, p:p + w]
    return jnp.transpose(out, (1, 0, 2, 3))            # (N, Cout, H, W)


def _ref_forward(x, params, *, eps=1e-5):
    # Pure-JAX reference matching the PyTorch module (training-mode BN, exact GELU).
    k = params["w1"].shape[-1]
    p = k // 2

    def conv(x, wgt, b):
        y = jax.lax.conv_general_dilated(
            x, wgt, window_strides=(1, 1), padding=[(p, p), (p, p)],
            dimension_numbers=("NCHW", "OIHW", "NCHW"))
        return y + b[None, :, None, None]

    def bn(z, g, be):
        mean = jnp.mean(z, axis=(0, 2, 3), keepdims=True)
        var = jnp.mean((z - mean) ** 2, axis=(0, 2, 3), keepdims=True)
        zn = (z - mean) / jnp.sqrt(var + eps)
        return zn * g[None, :, None, None] + be[None, :, None, None]

    z = _gelu_exact(bn(conv(x, params["w1"], params["b1"]), params["g1"], params["be1"]))
    z = _gelu_exact(bn(conv(z, params["w2"], params["b2"]), params["g2"], params["be2"]))
    return z


def init_params(key, input_size, output_size, hidden_size, kernel_size):
    k1, k2, k3, k4 = jax.random.split(key, 4)
    fan1 = input_size * kernel_size * kernel_size
    fan2 = hidden_size * kernel_size * kernel_size
    bound1 = 1.0 / math.sqrt(fan1)
    bound2 = 1.0 / math.sqrt(fan2)
    return {
        # conv weights stored PyTorch-style: (Cout, Cin, K, K)
        "w1": jax.random.uniform(k1, (hidden_size, input_size, kernel_size, kernel_size),
                                 jnp.float32, -bound1, bound1),
        "b1": jax.random.uniform(k2, (hidden_size,), jnp.float32, -bound1, bound1),
        "g1": jnp.ones((hidden_size,), jnp.float32),
        "be1": jnp.zeros((hidden_size,), jnp.float32),
        "w2": jax.random.uniform(k3, (output_size, hidden_size, kernel_size, kernel_size),
                                 jnp.float32, -bound2, bound2),
        "b2": jax.random.uniform(k4, (output_size,), jnp.float32, -bound2, bound2),
        "g2": jnp.ones((output_size,), jnp.float32),
        "be2": jnp.zeros((output_size,), jnp.float32),
    }


if __name__ == "__main__":
    # Module config: inputSize=4, outputSize=4, hiddenSize=8, kernelSize=3, stride=1
    N, Cin, H, W = 2, 4, 16, 16
    Chid, Cout, K = 8, 4, 3

    key = jax.random.PRNGKey(0)
    kx, kp = jax.random.split(key)
    x = jax.random.normal(kx, (N, Cin, H, W), jnp.float32)
    params = init_params(kp, Cin, Cout, Chid, K)

    out = jax.jit(conv_block_ablation_forward)(x, params)
    out = jax.block_until_ready(out)

    assert out.shape == (N, Cout, H, W), out.shape
    assert bool(jnp.all(jnp.isfinite(out)))

    ref = jax.jit(_ref_forward)(x, params)
    assert bool(jnp.allclose(out, ref, atol=1e-3, rtol=1e-3)), \
        float(jnp.max(jnp.abs(out - ref)))

    print("KERNEL_OK")
</pallas_src>

<mosaic_0001>
module attributes {stable_mosaic.version = 11 : i64} {
  func.func @_fused_convblock_kernel(%arg0: memref<8x768xf32, #tpu.memory_space<vmem>>, %arg1: memref<8x72xf32, #tpu.memory_space<vmem>>, %arg2: memref<8x1xf32, #tpu.memory_space<vmem>>, %arg3: memref<8x1xf32, #tpu.memory_space<vmem>>, %arg4: memref<8x72xf32, #tpu.memory_space<vmem>>, %arg5: memref<8x1xf32, #tpu.memory_space<vmem>>, %arg6: memref<8x1xf32, #tpu.memory_space<vmem>>, %arg7: memref<1x768xf32, #tpu.memory_space<vmem>>, %arg8: memref<8x768xf32, #tpu.memory_space<vmem>>, %arg9: memref<72x768xf32, #tpu.memory_space<vmem>>, %arg10: memref<72x768xf32, #tpu.memory_space<vmem>>) attributes {dimension_semantics = [], scalar_prefetch = 0 : i64, scratch_operands = 2 : i64, tpu.core_type = #tpu.core_type<tc>} {
    %c0 = arith.constant 0 : index
    %c0_0 = arith.constant 0 : index
    %0 = vector.load %arg7[%c0, %c0_0] : memref<1x768xf32, #tpu.memory_space<vmem>>, vector<1x768xf32>
    %cst = arith.constant 5.000000e-01 : f32
    %1 = vector.broadcast %cst : f32 to vector<1x768xf32>
    %2 = arith.cmpf ogt, %0, %1 : vector<1x768xf32>
    %c0_1 = arith.constant 0 : index
    %c0_2 = arith.constant 0 : index
    %3 = vector.load %arg0[%c0_1, %c0_2] : memref<8x768xf32, #tpu.memory_space<vmem>>, vector<8x768xf32>
    %4 = vector.extract_strided_slice %3 {offsets = [0, 0], sizes = [8, 749], strides = [1, 1]} : vector<8x768xf32> to vector<8x749xf32>
    %c0_3 = arith.constant 0 : index
    %c19 = arith.constant 19 : index
    %5 = vector.load %arg9[%c0_3, %c19] : memref<72x768xf32, #tpu.memory_space<vmem>>, vector<8x749xf32>
    tpu.vector_store %arg9[%c0_3, %c19], %4 {strides = array<i32>} : memref<72x768xf32, #tpu.memory_space<vmem>>, vector<8x749xf32>,
    %6 = vector.extract_strided_slice %3 {offsets = [0, 749], sizes = [8, 19], strides = [1, 1]} : vector<8x768xf32> to vector<8x19xf32>
    %c0_4 = arith.constant 0 : index
    %c0_5 = arith.constant 0 : index
    %7 = vector.load %arg9[%c0_4, %c0_5] : memref<72x768xf32, #tpu.memory_space<vmem>>, vector<8x19xf32>
    tpu.vector_store %arg9[%c0_4, %c0_5], %6 {strides = array<i32>} : memref<72x768xf32, #tpu.memory_space<vmem>>, vector<8x19xf32>,
    %8 = vector.extract_strided_slice %3 {offsets = [0, 0], sizes = [8, 750], strides = [1, 1]} : vector<8x768xf32> to vector<8x750xf32>
    %c8 = arith.constant 8 : index
    %c18 = arith.constant 18 : index
    %9 = vector.load %arg9[%c8, %c18] : memref<72x768xf32, #tpu.memory_space<vmem>>, vector<8x750xf32>
    tpu.vector_store %arg9[%c8, %c18], %8 {strides = array<i32>} : memref<72x768xf32, #tpu.memory_space<vmem>>, vector<8x750xf32>,
    %10 = vector.extract_strided_slice %3 {offsets = [0, 750], sizes = [8, 18], strides = [1, 1]} : vector<8x768xf32> to vector<8x18xf32>
    %c8_6 = arith.constant 8 : index
    %c0_7 = arith.constant 0 : index
    %11 = vector.load %arg9[%c8_6, %c0_7] : memref<72x768xf32, #tpu.memory_space<vmem>>, vector<8x18xf32>
    tpu.vector_store %arg9[%c8_6, %c0_7], %10 {strides = array<i32>} : memref<72x768xf32, #tpu.memory_space<vmem>>, vector<8x18xf32>,
    %12 = vector.extract_strided_slice %3 {offsets = [0, 0], sizes = [8, 751], strides = [1, 1]} : vector<8x768xf32> to vector<8x751xf32>
    %c16 = arith.constant 16 : index
    %c17 = arith.constant 17 : index
    %13 = vector.load %arg9[%c16, %c17] : memref<72x768xf32, #tpu.memory_space<vmem>>, vector<8x751xf32>
    tpu.vector_store %arg9[%c16, %c17], %12 {strides = array<i32>} : memref<72x768xf32, #tpu.memory_space<vmem>>, vector<8x751xf32>,
    %14 = vector.extract_strided_slice %3 {offsets = [0, 751], sizes = [8, 17], strides = [1, 1]} : vector<8x768xf32> to vector<8x17xf32>
    %c16_8 = arith.constant 16 : index
    %c0_9 = arith.constant 0 : index
    %15 = vector.load %arg9[%c16_8, %c0_9] : memref<72x768xf32, #tpu.memory_space<vmem>>, vector<8x17xf32>
    tpu.vector_store %arg9[%c16_8, %c0_9], %14 {strides = array<i32>} : memref<72x768xf32, #tpu.memory_space<vmem>>, vector<8x17xf32>,
    %16 = vector.extract_strided_slice %3 {offsets = [0, 0], sizes = [8, 767], strides = [1, 1]} : vector<8x768xf32> to vector<8x767xf32>
    %c24 = arith.constant 24 : index
    %c1 = arith.constant 1 : index
    %17 = vector.load %arg9[%c24, %c1] : memref<72x768xf32, #tpu.memory_space<vmem>>, vector<8x767xf32>
    tpu.vector_store %arg9[%c24, %c1], %16 {strides = array<i32>} : memref<72x768xf32, #tpu.memory_space<vmem>>, vector<8x767xf32>,
    %18 = vector.extract_strided_slice %3 {offsets = [0, 767], sizes = [8, 1], strides = [1, 1]} : vector<8x768xf32> to vector<8x1xf32>
    %c24_10 = arith.constant 24 : index
    %c0_11 = arith.constant 0 : index
    %19 = vector.load %arg9[%c24_10, %c0_11] : memref<72x768xf32, #tpu.memory_space<vmem>>, vector<8x1xf32>
    tpu.vector_store %arg9[%c24_10, %c0_11], %18 {strides = array<i32>} : memref<72x768xf32, #tpu.memory_space<vmem>>, vector<8x1xf32>,
    %c32 = arith.constant 32 : index
    %c0_12 = arith.constant 0 : index
    %20 = vector.load %arg9[%c32, %c0_12] : memref<72x768xf32, #tpu.memory_space<vmem>>, vector<8x768xf32>
    tpu.vector_store %arg9[%c32, %c0_12], %3 {strides = array<i32>} : memref<72x768xf32, #tpu.memory_space<vmem>>, vector<8x768xf32>,
    %21 = vector.extract_strided_slice %3 {offsets = [0, 1], sizes = [8, 767], strides = [1, 1]} : vector<8x768xf32> to vector<8x767xf32>
    %c40 = arith.constant 40 : index
    %c0_13 = arith.constant 0 : index
    %22 = vector.load %arg9[%c40, %c0_13] : memref<72x768xf32, #tpu.memory_space<vmem>>, vector<8x767xf32>
    tpu.vector_store %arg9[%c40, %c0_13], %21 {strides = array<i32>} : memref<72x768xf32, #tpu.memory_space<vmem>>, vector<8x767xf32>,
    %23 = vector.extract_strided_slice %3 {offsets = [0, 0], sizes = [8, 1], strides = [1, 1]} : vector<8x768xf32> to vector<8x1xf32>
    %c40_14 = arith.constant 40 : index
    %c767 = arith.constant 767 : index
    %24 = vector.load %arg9[%c40_14, %c767] : memref<72x768xf32, #tpu.memory_space<vmem>>, vector<8x1xf32>
    tpu.vector_store %arg9[%c40_14, %c767], %23 {strides = array<i32>} : memref<72x768xf32, #tpu.memory_space<vmem>>, vector<8x1xf32>,
    %25 = vector.extract_strided_slice %3 {offsets = [0, 17], sizes = [8, 751], strides = [1, 1]} : vector<8x768xf32> to vector<8x751xf32>
    %c48 = arith.constant 48 : index
    %c0_15 = arith.constant 0 : index
    %26 = vector.load %arg9[%c48, %c0_15] : memref<72x768xf32, #tpu.memory_space<vmem>>, vector<8x751xf32>
    tpu.vector_store %arg9[%c48, %c0_15], %25 {strides = array<i32>} : memref<72x768xf32, #tpu.memory_space<vmem>>, vector<8x751xf32>,
    %27 = vector.extract_strided_slice %3 {offsets = [0, 0], sizes = [8, 17], strides = [1, 1]} : vector<8x768xf32> to vector<8x17xf32>
    %c48_16 = arith.constant 48 : index
    %c751 = arith.constant 751 : index
    %28 = vector.load %arg9[%c48_16, %c751] : memref<72x768xf32, #tpu.memory_space<vmem>>, vector<8x17xf32>
    tpu.vector_store %arg9[%c48_16, %c751], %27 {strides = array<i32>} : memref<72x768xf32, #tpu.memory_space<vmem>>, vector<8x17xf32>,
    %29 = vector.extract_strided_slice %3 {offsets = [0, 18], sizes = [8, 750], strides = [1, 1]} : vector<8x768xf32> to vector<8x750xf32>
    %c56 = arith.constant 56 : index
    %c0_17 = arith.constant 0 : index
    %30 = vector.load %arg9[%c56, %c0_17] : memref<72x768xf32, #tpu.memory_space<vmem>>, vector<8x750xf32>
    tpu.vector_store %arg9[%c56, %c0_17], %29 {strides = array<i32>} : memref<72x768xf32, #tpu.memory_space<vmem>>, vector<8x750xf32>,
    %31 = vector.extract_strided_slice %3 {offsets = [0, 0], sizes = [8, 18], strides = [1, 1]} : vector<8x768xf32> to vector<8x18xf32>
    %c56_18 = arith.constant 56 : index
    %c750 = arith.constant 750 : index
    %32 = vector.load %arg9[%c56_18, %c750] : memref<72x768xf32, #tpu.memory_space<vmem>>, vector<8x18xf32>
    tpu.vector_store %arg9[%c56_18, %c750], %31 {strides = array<i32>} : memref<72x768xf32, #tpu.memory_space<vmem>>, vector<8x18xf32>,
    %33 = vector.extract_strided_slice %3 {offsets = [0, 19], sizes = [8, 749], strides = [1, 1]} : vector<8x768xf32> to vector<8x749xf32>
    %c64 = arith.constant 64 : index
    %c0_19 = arith.constant 0 : index
    %34 = vector.load %arg9[%c64, %c0_19] : memref<72x768xf32, #tpu.memory_space<vmem>>, vector<8x749xf32>
    tpu.vector_store %arg9[%c64, %c0_19], %33 {strides = array<i32>} : memref<72x768xf32, #tpu.memory_space<vmem>>, vector<8x749xf32>,
    %35 = vector.extract_strided_slice %3 {offsets = [0, 0], sizes = [8, 19], strides = [1, 1]} : vector<8x768xf32> to vector<8x19xf32>
    %c64_20 = arith.constant 64 : index
    %c749 = arith.constant 749 : index
    %36 = vector.load %arg9[%c64_20, %c749] : memref<72x768xf32, #tpu.memory_space<vmem>>, vector<8x19xf32>
    tpu.vector_store %arg9[%c64_20, %c749], %35 {strides = array<i32>} : memref<72x768xf32, #tpu.memory_space<vmem>>, vector<8x19xf32>,
    %c0_21 = arith.constant 0 : index
    %c0_22 = arith.constant 0 : index
    %37 = vector.load %arg1[%c0_21, %c0_22] : memref<8x72xf32, #tpu.memory_space<vmem>>, vector<8x72xf32>
    %c0_23 = arith.constant 0 : index
    %c0_24 = arith.constant 0 : index
    %38 = vector.load %arg9[%c0_23, %c0_24] : memref<72x768xf32, #tpu.memory_space<vmem>>, vector<72x768xf32>
    %cst_25 = arith.constant dense<0.000000e+00> : vector<8x768xf32>
    %39 = tpu.matmul %37, %38, %cst_25 {dimension_numbers = #tpu.dot_dimension_numbers<[1], [0], [0], [1], [0, 0, 1, 1], [], []>} : vector<8x72xf32>, vector<72x768xf32>, vector<8x768xf32> -> vector<8x768xf32>
    %c0_26 = arith.constant 0 : index
    %c0_27 = arith.constant 0 : index
    %40 = vector.load %arg2[%c0_26, %c0_27] : memref<8x1xf32, #tpu.memory_space<vmem>>, vector<8x1xf32>
    %c0_28 = arith.constant 0 : index
    %c0_29 = arith.constant 0 : index
    %41 = vector.load %arg3[%c0_28, %c0_29] : memref<8x1xf32, #tpu.memory_space<vmem>>, vector<8x1xf32>
    %cst_30 = arith.constant 0.000000e+00 : f32
    %42 = vector.shape_cast %2 : vector<1x768xi1> to vector<1x768xi1>
    %43 = vector.broadcast %42 : vector<1x768xi1> to vector<8x768xi1>
    %44 = vector.broadcast %cst_30 : f32 to vector<8x768xf32>
    %45 = arith.select %43, %39, %44 : vector<8x768xi1>, vector<8x768xf32>
    %cst_31 = arith.constant dense<0.000000e+00> : vector<8xf32>
    %46 = vector.multi_reduction <add>, %45, %cst_31 [1] : vector<8x768xf32> to vector<8xf32>
    %47 = vector.shape_cast %46 : vector<8xf32> to vector<8x1xf32>
    %48 = arith.mulf %45, %45 : vector<8x768xf32>
    %cst_32 = arith.constant dense<0.000000e+00> : vector<8xf32>
    %49 = vector.multi_reduction <add>, %48, %cst_32 [1] : vector<8x768xf32> to vector<8xf32>
    %50 = vector.shape_cast %49 : vector<8xf32> to vector<8x1xf32>
    %cst_33 = arith.constant 0.001953125 : f32
    %51 = vector.broadcast %cst_33 : f32 to vector<8x1xf32>
    %52 = arith.mulf %47, %51 : vector<8x1xf32>
    %cst_34 = arith.constant 0.001953125 : f32
    %53 = vector.broadcast %cst_34 : f32 to vector<8x1xf32>
    %54 = arith.mulf %50, %53 : vector<8x1xf32>
    %55 = arith.mulf %52, %52 : vector<8x1xf32>
    %56 = arith.subf %54, %55 : vector<8x1xf32>
    %57 = vector.broadcast %52 : vector<8x1xf32> to vector<8x768xf32>
    %58 = arith.subf %39, %57 : vector<8x768xf32>
    %cst_35 = arith.constant 9.99999974E-6 : f32
    %59 = vector.broadcast %cst_35 : f32 to vector<8x1xf32>
    %60 = arith.addf %56, %59 : vector<8x1xf32>
    %61 = math.rsqrt %60 : vector<8x1xf32>
    %62 = vector.broadcast %61 : vector<8x1xf32> to vector<8x768xf32>
    %63 = arith.mulf %58, %62 : vector<8x768xf32>
    %64 = vector.broadcast %40 : vector<8x1xf32> to vector<8x768xf32>
    %65 = arith.mulf %63, %64 : vector<8x768xf32>
    %66 = vector.broadcast %41 : vector<8x1xf32> to vector<8x768xf32>
    %67 = arith.addf %65, %66 : vector<8x768xf32>
    %cst_36 = arith.constant 5.000000e-01 : f32
    %68 = vector.broadcast %cst_36 : f32 to vector<8x768xf32>
    %69 = arith.mulf %68, %67 : vector<8x768xf32>
    %cst_37 = arith.constant 0.707106769 : f32
    %70 = vector.broadcast %cst_37 : f32 to vector<8x768xf32>
    %71 = arith.mulf %67, %70 : vector<8x768xf32>
    %72 = math.erf %71 : vector<8x768xf32>
    %cst_38 = arith.constant 1.000000e+00 : f32
    %73 = vector.broadcast %cst_38 : f32 to vector<8x768xf32>
    %74 = arith.addf %73, %72 : vector<8x768xf32>
    %75 = arith.mulf %69, %74 : vector<8x768xf32>
    %cst_39 = arith.constant 0.000000e+00 : f32
    %76 = vector.shape_cast %2 : vector<1x768xi1> to vector<1x768xi1>
    %77 = vector.broadcast %76 : vector<1x768xi1> to vector<8x768xi1>
    %78 = vector.broadcast %cst_39 : f32 to vector<8x768xf32>
    %79 = arith.select %77, %75, %78 : vector<8x768xi1>, vector<8x768xf32>
    %80 = vector.extract_strided_slice %79 {offsets = [0, 0], sizes = [8, 749], strides = [1, 1]} : vector<8x768xf32> to vector<8x749xf32>
    %c0_40 = arith.constant 0 : index
    %c19_41 = arith.constant 19 : index
    %81 = vector.load %arg10[%c0_40, %c19_41] : memref<72x768xf32, #tpu.memory_space<vmem>>, vector<8x749xf32>
    tpu.vector_store %arg10[%c0_40, %c19_41], %80 {strides = array<i32>} : memref<72x768xf32, #tpu.memory_space<vmem>>, vector<8x749xf32>,
    %82 = vector.extract_strided_slice %79 {offsets = [0, 749], sizes = [8, 19], strides = [1, 1]} : vector<8x768xf32> to vector<8x19xf32>
    %c0_42 = arith.constant 0 : index
    %c0_43 = arith.constant 0 : index
    %83 = vector.load %arg10[%c0_42, %c0_43] : memref<72x768xf32, #tpu.memory_space<vmem>>, vector<8x19xf32>
    tpu.vector_store %arg10[%c0_42, %c0_43], %82 {strides = array<i32>} : memref<72x768xf32, #tpu.memory_space<vmem>>, vector<8x19xf32>,
    %84 = vector.extract_strided_slice %79 {offsets = [0, 0], sizes = [8, 750], strides = [1, 1]} : vector<8x768xf32> to vector<8x750xf32>
    %c8_44 = arith.constant 8 : index
    %c18_45 = arith.constant 18 : index
    %85 = vector.load %arg10[%c8_44, %c18_45] : memref<72x768xf32, #tpu.memory_space<vmem>>, vector<8x750xf32>
    tpu.vector_store %arg10[%c8_44, %c18_45], %84 {strides = array<i32>} : memref<72x768xf32, #tpu.memory_space<vmem>>, vector<8x750xf32>,
    %86 = vector.extract_strided_slice %79 {offsets = [0, 750], sizes = [8, 18], strides = [1, 1]} : vector<8x768xf32> to vector<8x18xf32>
    %c8_46 = arith.constant 8 : index
    %c0_47 = arith.constant 0 : index
    %87 = vector.load %arg10[%c8_46, %c0_47] : memref<72x768xf32, #tpu.memory_space<vmem>>, vector<8x18xf32>
    tpu.vector_store %arg10[%c8_46, %c0_47], %86 {strides = array<i32>} : memref<72x768xf32, #tpu.memory_space<vmem>>, vector<8x18xf32>,
    %88 = vector.extract_strided_slice %79 {offsets = [0, 0], sizes = [8, 751], strides = [1, 1]} : vector<8x768xf32> to vector<8x751xf32>
    %c16_48 = arith.constant 16 : index
    %c17_49 = arith.constant 17 : index
    %89 = vector.load %arg10[%c16_48, %c17_49] : memref<72x768xf32, #tpu.memory_space<vmem>>, vector<8x751xf32>
    tpu.vector_store %arg10[%c16_48, %c17_49], %88 {strides = array<i32>} : memref<72x768xf32, #tpu.memory_space<vmem>>, vector<8x751xf32>,
    %90 = vector.extract_strided_slice %79 {offsets = [0, 751], sizes = [8, 17], strides = [1, 1]} : vector<8x768xf32> to vector<8x17xf32>
    %c16_50 = arith.constant 16 : index
    %c0_51 = arith.constant 0 : index
    %91 = vector.load %arg10[%c16_50, %c0_51] : memref<72x768xf32, #tpu.memory_space<vmem>>, vector<8x17xf32>
    tpu.vector_store %arg10[%c16_50, %c0_51], %90 {strides = array<i32>} : memref<72x768xf32, #tpu.memory_space<vmem>>, vector<8x17xf32>,
    %92 = vector.extract_strided_slice %79 {offsets = [0, 0], sizes = [8, 767], strides = [1, 1]} : vector<8x768xf32> to vector<8x767xf32>
    %c24_52 = arith.constant 24 : index
    %c1_53 = arith.constant 1 : index
    %93 = vector.load %arg10[%c24_52, %c1_53] : memref<72x768xf32, #tpu.memory_space<vmem>>, vector<8x767xf32>
    tpu.vector_store %arg10[%c24_52, %c1_53], %92 {strides = array<i32>} : memref<72x768xf32, #tpu.memory_space<vmem>>, vector<8x767xf32>,
    %94 = vector.extract_strided_slice %79 {offsets = [0, 767], sizes = [8, 1], strides = [1, 1]} : vector<8x768xf32> to vector<8x1xf32>
    %c24_54 = arith.constant 24 : index
    %c0_55 = arith.constant 0 : index
    %95 = vector.load %arg10[%c24_54, %c0_55] : memref<72x768xf32, #tpu.memory_space<vmem>>, vector<8x1xf32>
    tpu.vector_store %arg10[%c24_54, %c0_55], %94 {strides = array<i32>} : memref<72x768xf32, #tpu.memory_space<vmem>>, vector<8x1xf32>,
    %c32_56 = arith.constant 32 : index
    %c0_57 = arith.constant 0 : index
    %96 = vector.load %arg10[%c32_56, %c0_57] : memref<72x768xf32, #tpu.memory_space<vmem>>, vector<8x768xf32>
    tpu.vector_store %arg10[%c32_56, %c0_57], %79 {strides = array<i32>} : memref<72x768xf32, #tpu.memory_space<vmem>>, vector<8x768xf32>,
    %97 = vector.extract_strided_slice %79 {offsets = [0, 1], sizes = [8, 767], strides = [1, 1]} : vector<8x768xf32> to vector<8x767xf32>
    %c40_58 = arith.constant 40 : index
    %c0_59 = arith.constant 0 : index
    %98 = vector.load %arg10[%c40_58, %c0_59] : memref<72x768xf32, #tpu.memory_space<vmem>>, vector<8x767xf32>
    tpu.vector_store %arg10[%c40_58, %c0_59], %97 {strides = array<i32>} : memref<72x768xf32, #tpu.memory_space<vmem>>, vector<8x767xf32>,
    %99 = vector.extract_strided_slice %79 {offsets = [0, 0], sizes = [8, 1], strides = [1, 1]} : vector<8x768xf32> to vector<8x1xf32>
    %c40_60 = arith.constant 40 : index
    %c767_61 = arith.constant 767 : index
    %100 = vector.load %arg10[%c40_60, %c767_61] : memref<72x768xf32, #tpu.memory_space<vmem>>, vector<8x1xf32>
    tpu.vector_store %arg10[%c40_60, %c767_61], %99 {strides = array<i32>} : memref<72x768xf32, #tpu.memory_space<vmem>>, vector<8x1xf32>,
    %101 = vector.extract_strided_slice %79 {offsets = [0, 17], sizes = [8, 751], strides = [1, 1]} : vector<8x768xf32> to vector<8x751xf32>
    %c48_62 = arith.constant 48 : index
    %c0_63 = arith.constant 0 : index
    %102 = vector.load %arg10[%c48_62, %c0_63] : memref<72x768xf32, #tpu.memory_space<vmem>>, vector<8x751xf32>
    tpu.vector_store %arg10[%c48_62, %c0_63], %101 {strides = array<i32>} : memref<72x768xf32, #tpu.memory_space<vmem>>, vector<8x751xf32>,
    %103 = vector.extract_strided_slice %79 {offsets = [0, 0], sizes = [8, 17], strides = [1, 1]} : vector<8x768xf32> to vector<8x17xf32>
    %c48_64 = arith.constant 48 : index
    %c751_65 = arith.constant 751 : index
    %104 = vector.load %arg10[%c48_64, %c751_65] : memref<72x768xf32, #tpu.memory_space<vmem>>, vector<8x17xf32>
    tpu.vector_store %arg10[%c48_64, %c751_65], %103 {strides = array<i32>} : memref<72x768xf32, #tpu.memory_space<vmem>>, vector<8x17xf32>,
    %105 = vector.extract_strided_slice %79 {offsets = [0, 18], sizes = [8, 750], strides = [1, 1]} : vector<8x768xf32> to vector<8x750xf32>
    %c56_66 = arith.constant 56 : index
    %c0_67 = arith.constant 0 : index
    %106 = vector.load %arg10[%c56_66, %c0_67] : memref<72x768xf32, #tpu.memory_space<vmem>>, vector<8x750xf32>
    tpu.vector_store %arg10[%c56_66, %c0_67], %105 {strides = array<i32>} : memref<72x768xf32, #tpu.memory_space<vmem>>, vector<8x750xf32>,
    %107 = vector.extract_strided_slice %79 {offsets = [0, 0], sizes = [8, 18], strides = [1, 1]} : vector<8x768xf32> to vector<8x18xf32>
    %c56_68 = arith.constant 56 : index
    %c750_69 = arith.constant 750 : index
    %108 = vector.load %arg10[%c56_68, %c750_69] : memref<72x768xf32, #tpu.memory_space<vmem>>, vector<8x18xf32>
    tpu.vector_store %arg10[%c56_68, %c750_69], %107 {strides = array<i32>} : memref<72x768xf32, #tpu.memory_space<vmem>>, vector<8x18xf32>,
    %109 = vector.extract_strided_slice %79 {offsets = [0, 19], sizes = [8, 749], strides = [1, 1]} : vector<8x768xf32> to vector<8x749xf32>
    %c64_70 = arith.constant 64 : index
    %c0_71 = arith.constant 0 : index
    %110 = vector.load %arg10[%c64_70, %c0_71] : memref<72x768xf32, #tpu.memory_space<vmem>>, vector<8x749xf32>
    tpu.vector_store %arg10[%c64_70, %c0_71], %109 {strides = array<i32>} : memref<72x768xf32, #tpu.memory_space<vmem>>, vector<8x749xf32>,
    %111 = vector.extract_strided_slice %79 {offsets = [0, 0], sizes = [8, 19], strides = [1, 1]} : vector<8x768xf32> to vector<8x19xf32>
    %c64_72 = arith.constant 64 : index
    %c749_73 = arith.constant 749 : index
    %112 = vector.load %arg10[%c64_72, %c749_73] : memref<72x768xf32, #tpu.memory_space<vmem>>, vector<8x19xf32>
    tpu.vector_store %arg10[%c64_72, %c749_73], %111 {strides = array<i32>} : memref<72x768xf32, #tpu.memory_space<vmem>>, vector<8x19xf32>,
    %c0_74 = arith.constant 0 : index
    %c0_75 = arith.constant 0 : index
    %113 = vector.load %arg4[%c0_74, %c0_75] : memref<8x72xf32, #tpu.memory_space<vmem>>, vector<8x72xf32>
    %c0_76 = arith.constant 0 : index
    %c0_77 = arith.constant 0 : index
    %114 = vector.load %arg10[%c0_76, %c0_77] : memref<72x768xf32, #tpu.memory_space<vmem>>, vector<72x768xf32>
    %cst_78 = arith.constant dense<0.000000e+00> : vector<8x768xf32>
    %115 = tpu.matmul %113, %114, %cst_78 {dimension_numbers = #tpu.dot_dimension_numbers<[1], [0], [0], [1], [0, 0, 1, 1], [], []>} : vector<8x72xf32>, vector<72x768xf32>, vector<8x768xf32> -> vector<8x768xf32>
    %c0_79 = arith.constant 0 : index
    %c0_80 = arith.constant 0 : index
    %116 = vector.load %arg5[%c0_79, %c0_80] : memref<8x1xf32, #tpu.memory_space<vmem>>, vector<8x1xf32>
    %c0_81 = arith.constant 0 : index
    %c0_82 = arith.constant 0 : index
    %117 = vector.load %arg6[%c0_81, %c0_82] : memref<8x1xf32, #tpu.memory_space<vmem>>, vector<8x1xf32>
    %cst_83 = arith.constant 0.000000e+00 : f32
    %118 = vector.shape_cast %2 : vector<1x768xi1> to vector<1x768xi1>
    %119 = vector.broadcast %118 : vector<1x768xi1> to vector<8x768xi1>
    %120 = vector.broadcast %cst_83 : f32 to vector<8x768xf32>
    %121 = arith.select %119, %115, %120 : vector<8x768xi1>, vector<8x768xf32>
    %cst_84 = arith.constant dense<0.000000e+00> : vector<8xf32>
    %122 = vector.multi_reduction <add>, %121, %cst_84 [1] : vector<8x768xf32> to vector<8xf32>
    %123 = vector.shape_cast %122 : vector<8xf32> to vector<8x1xf32>
    %124 = arith.mulf %121, %121 : vector<8x768xf32>
    %cst_85 = arith.constant dense<0.000000e+00> : vector<8xf32>
    %125 = vector.multi_reduction <add>, %124, %cst_85 [1] : vector<8x768xf32> to vector<8xf32>
    %126 = vector.shape_cast %125 : vector<8xf32> to vector<8x1xf32>
    %cst_86 = arith.constant 0.001953125 : f32
    %127 = vector.broadcast %cst_86 : f32 to vector<8x1xf32>
    %128 = arith.mulf %123, %127 : vector<8x1xf32>
    %cst_87 = arith.constant 0.001953125 : f32
    %129 = vector.broadcast %cst_87 : f32 to vector<8x1xf32>
    %130 = arith.mulf %126, %129 : vector<8x1xf32>
    %131 = arith.mulf %128, %128 : vector<8x1xf32>
    %132 = arith.subf %130, %131 : vector<8x1xf32>
    %133 = vector.broadcast %128 : vector<8x1xf32> to vector<8x768xf32>
    %134 = arith.subf %115, %133 : vector<8x768xf32>
    %cst_88 = arith.constant 9.99999974E-6 : f32
    %135 = vector.broadcast %cst_88 : f32 to vector<8x1xf32>
    %136 = arith.addf %132, %135 : vector<8x1xf32>
    %137 = math.rsqrt %136 : vector<8x1xf32>
    %138 = vector.broadcast %137 : vector<8x1xf32> to vector<8x768xf32>
    %139 = arith.mulf %134, %138 : vector<8x768xf32>
    %140 = vector.broadcast %116 : vector<8x1xf32> to vector<8x768xf32>
    %141 = arith.mulf %139, %140 : vector<8x768xf32>
    %142 = vector.broadcast %117 : vector<8x1xf32> to vector<8x768xf32>
    %143 = arith.addf %141, %142 : vector<8x768xf32>
    %cst_89 = arith.constant 5.000000e-01 : f32
    %144 = vector.broadcast %cst_89 : f32 to vector<8x768xf32>
    %145 = arith.mulf %144, %143 : vector<8x768xf32>
    %cst_90 = arith.constant 0.707106769 : f32
    %146 = vector.broadcast %cst_90 : f32 to vector<8x768xf32>
    %147 = arith.mulf %143, %146 : vector<8x768xf32>
    %148 = math.erf %147 : vector<8x768xf32>
    %cst_91 = arith.constant 1.000000e+00 : f32
    %149 = vector.broadcast %cst_91 : f32 to vector<8x768xf32>
    %150 = arith.addf %149, %148 : vector<8x768xf32>
    %151 = arith.mulf %145, %150 : vector<8x768xf32>
    %c0_92 = arith.constant 0 : index
    %c0_93 = arith.constant 0 : index
    %152 = vector.load %arg8[%c0_92, %c0_93] : memref<8x768xf32, #tpu.memory_space<vmem>>, vector<8x768xf32>
    tpu.vector_store %arg8[%c0_92, %c0_93], %151 {strides = array<i32>} : memref<8x768xf32, #tpu.memory_space<vmem>>, vector<8x768xf32>,
    return
  }
}

</mosaic_0001>

<bundles_post_ra>
// kernel: tile.6
= control target key start
LH: loop header
LB: loop body
LE: loop exit
PB: predicated region body
PF: predicated region fallthrough
CT: control target
= control target key end

     0   :  { %v33_v4 = vmov 0   ;;  %s56_s0 = inlined_call_operand.vmem [shape: pred[324], index: 0, kind: input, shape index: {}]   ;;  %s57_s1 = inlined_call_operand.vmem [shape: pred[2,324], index: 1, kind: output, shape index: {}]  }
   0x1   :  { %v4_v0 = vld [vmem:[%s56_s0] ss:$0 sm:$0xff] }
   0x2   :  { %v7_v1 = vand.u32 255, %v4_v0  ;;  %v14_v2 = vshra.s32 %v4_v0, 8  ;;  %v23_v3 = vshra.s32 %v4_v0, 16 }
   0x4   :  { %v8_v5 = vpack.c.b16 %v33_v4, %v7_v1  ;;  %v15_v6 = vand.u32 255, %v14_v2  ;;  %v24_v7 = vand.u32 255, %v23_v3 }
   0x6   :  { %v9_v8 = vpack.c.b8 %v33_v4, %v8_v5  ;;  %v17_v9 = vpack.c.b16 %v33_v4, %v15_v6  ;;  %v26_v10 = vpack.c.b16 %v33_v4, %v24_v7 }
   0x8   :  { %11 = vst [vmem:[%s57_s1] sm:$0x1] %v9_v8  ;;  %v18_v11 = vpack.c.b8 %v33_v4, %v17_v9  ;;  %v27_v12 = vpack.c.b8 %v33_v4, %v26_v10 }
   0xa   :  { %30 = vst [vmem:[%s57_s1 + $0x1] sm:$0x1] %v18_v11  ;;  %31 = vst [vmem:[%s57_s1 + $0x2] sm:$0x1] %v27_v12 }

// kernel: tile.7
= control target key start
LH: loop header
LB: loop body
LE: loop exit
PB: predicated region body
PF: predicated region fallthrough
CT: control target
= control target key end

     0   :  { %vm61_vm0 = vcmask 490496   ;;  %vm51_vm1 = vcmask 556032   ;;  %s72_s12 = smov 3  ;;  %s93_s13 = smov 68   ;;  %vm65_vm2 = vcmask 64512   ;;  %vm68_vm3 = vcmask 1048096   ;;  %s119_s0 = inlined_call_operand.vmem [shape: pred[2,324], index: 0, kind: input, shape index: {}]   ;;  %s120_s1 = inlined_call_operand.vmem [shape: pred[648], index: 1, kind: output, shape index: {}]  }
   0x1   :  { %v89_v0 = vld [vmem:[%s119_s0 + $0x2] sm:$0x1]  ;;  %v90_v1 = vld [vmem:[%s119_s0 + $0x1] sm:$0x1]  ;;  %v43_v2 = vld [vmem:[%s119_s0] sm:$0x1] }
   0x2   :  { %v15_v3 = vunpack.c.0.s8 %v89_v0  ;;  %v30_v4 = vunpack.c.0.s8 %v90_v1  ;;  %v44_v5 = vunpack.c.0.s8 %v43_v2  ;;  %s54_s0 = smov 3  ;;  %v94_v15 = vmov 0  }
   0x4   :  { %20 = vst [vmem:[#allocation1 + $0x10] sm:$0xf] %v15_v3  ;;  %35 = vst [vmem:[#allocation1 + $0x8] sm:$0xf] %v30_v4 }
   0x5   :  { %48 = vst [vmem:[#allocation1] sm:$0xf] %v44_v5 }
   0xb   :  { %v58_v6 = vld [vmem:[#allocation1 + $0x11] sm:$0x1]   ;;  %v50_v10 = vld [vmem:[#allocation1 + $0x10] sm:$0x1]  }
   0xc   :  { %v60_v7 = vld [vmem:[#allocation1 + $0x1] ss:$8 sm:$0x7]   ;;  %v55_v9 = vld [vmem:[#allocation1] ss:$8 sm:%s54_s0]  }
   0xd   :  { %v62_v8 = vsel %vm61_vm0, %v60_v7, %v58_v6  ;;  %56 = vst [vmem:[#allocation0] sm:$0x3] %v55_v9   ;;  %53 = vst.msk [vmem:[#allocation0 + $0x2] sm:$0x1] %vm51_vm1, %v50_v10   ;;  %v73_v11 = vld [vmem:[#allocation1 + $0x1] ss:$8 sm:%s72_s12]  }
   0xe   :  { %63 = vrot.lane.b32.xlu0 %v62_v8, %s93_s13 }
  0x12   :  { %74 = vrot.lane.b32.xlu0 %v73_v11, %s93_s13 }
  0x80   :  { %v64_v12 = vpop.permute.xlu0 %63  }
  0x81   :  { %67 = vst.msk [vmem:[#allocation0 + $0x5] sm:$0x1] %vm65_vm2, %v64_v12  }
  0x82   :  { %70 = vst.msk [vmem:[#allocation0 + $0x2] sm:$0x7] %vm68_vm3, %v64_v12  }
  0x84   :  { %v75_v13 = vpop.permute.xlu0 %74  }
  0x85   :  { %78 = vst.msk [vmem:[#allocation0 + $0x3] sm:$0x3] %vm51_vm1, %v75_v13  }
  0x8c   :  { %v83_v14 = vld [vmem:[#allocation0] sm:$0xff] }
  0x8d   :  { %v85_v16 = vpack.c.b16 %v94_v15, %v83_v14 }
  0x8f   :  { %v86_v17 = vpack.c.b8 %v94_v15, %v85_v16 }
  0x91   :  { %87 = vst [vmem:[%s120_s1] sm:$0x3] %v86_v17 }

// kernel: conv_block_ablation_forward.1
= control target key start
LH: loop header
LB: loop body
LE: loop exit
PB: predicated region body
PF: predicated region fallthrough
CT: control target
= control target key end

     0   :  { %s1519_s11 = smov 18   ;;  %s1520_s12 = smov 19   ;;  %v1526_v6 = vmov 0.0   ;;  %vm100_vm0 = vcmask 1047696   ;;  %vm67_vm1 = vcmask 1047704   ;;  %vm88_vm2 = vcmask 146432   ;;  %s2149_s0 = inlined_call_operand.vmem [shape: f32[8,768], index: 0, kind: input, shape index: {}]   ;;  %s2150_s1 = inlined_call_operand.vmem [shape: f32[8,72], index: 1, kind: input, shape index: {}]   ;;  %s2151_s7 = inlined_call_operand.vmem [shape: f32[1,768], index: 7, kind: input, shape index: {}]   ;;  %s2152_s3 = inlined_call_operand.vmem [shape: f32[8,1], index: 3, kind: input, shape index: {}]   ;;  %s2153_s2 = inlined_call_operand.vmem [shape: f32[8,1], index: 2, kind: input, shape index: {}]   ;;  %s2154_s4 = inlined_call_operand.vmem [shape: f32[8,72], index: 4, kind: input, shape index: {}]   ;;  %s2155_s6 = inlined_call_operand.vmem [shape: f32[8,1], index: 6, kind: input, shape index: {}]   ;;  %s2156_s5 = inlined_call_operand.vmem [shape: f32[8,1], index: 5, kind: input, shape index: {}]   ;;  %s2157_s8 = inlined_call_operand.vmem [shape: f32[8,768], index: 8, kind: output, shape index: {}]  }
   0x1   :  { %v1578_v0 = vld [vmem:[%s2149_s0] sm:$0xff]  ;;  %v1583_v1 = vld [vmem:[%s2149_s0 + $0x8] sm:$0xff]  ;;  %v1597_v3 = vld [vmem:[%s2149_s0 + $0x10] sm:$0xff]  ;;  %s1521_s19 = smov 17   ;;  %s1523_s20 = smov 127   ;;  %436 = vmatprep.mubr.f32.mxu0 %v1526_v6  ;;  %507 = vmatprep.mubr.f32.mxu1 %v1526_v6  ;;  %vm55_vm3 = vcmask 154624  }
   0x2   :  { %v1588_v2 = vld [vmem:[%s2149_s0 + $0x28] sm:$0xff]  ;;  %76 = vrot.lane.b32.xlu1 %v1578_v0, %s1519_s11  ;;  %43 = vrot.lane.b32.xlu0 %v1578_v0, %s1520_s12  ;;  %v1602_v4 = vld [vmem:[%s2149_s0 + $0x18] sm:$0xff]  ;;  %s1524_s21 = smov 111   ;;  %s1525_s22 = smov 110   ;;  %vm121_vm4 = vcmask 138240   ;;  %vm133_vm5 = vcmask 1047688  }
   0x3   :  { %v1607_v5 = vld [vmem:[%s2149_s0 + $0x20] sm:$0xff]  ;;  %s1522_s0 = smov 1   ;;  %s1527_s23 = smov 109   ;;  %vm154_vm6 = vcmask 7168   ;;  %vm166_vm7 = vcmask 1047560   ;;  %vm193_vm8 = vcmask 1039360  }
   0x4   :  { %vm226_vm9 = vcmask 908288   ;;  %vm2164_vm10 = vcmask 900096   ;;  %vm2162_vm11 = vcmask 891904   ;;  %vm2160_vm12 = vcmask 588800  }
   0x5   :  { %vm2163_vm13 = vcmask 1048568   ;;  %vm2158_vm14 = vcmask 1048440   ;;  %vm2161_vm15 = vcmask 1048432  }
   0x6   :  { %78 = vrot.lane.b32.xlu1 %v1583_v1, %s1519_s11  ;;  %45 = vrot.lane.b32.xlu0 %v1583_v1, %s1520_s12 }
   0xa   :  { %86 = vrot.lane.b32.xlu1 %v1588_v2, %s1519_s11  ;;  %53 = vrot.lane.b32.xlu0 %v1588_v2, %s1520_s12 }
   0xe   :  { %111 = vrot.lane.b32.xlu1 %v1583_v1, %s1521_s19  ;;  %109 = vrot.lane.b32.xlu0 %v1578_v0, %s1521_s19 }
  0x12   :  { %144 = vrot.lane.b32.xlu1 %v1583_v1, %s1522_s0  ;;  %142 = vrot.lane.b32.xlu0 %v1578_v0, %s1522_s0 }
  0x16   :  { %152 = vrot.lane.b32.xlu1 %v1588_v2, %s1522_s0  ;;  %119 = vrot.lane.b32.xlu0 %v1588_v2, %s1521_s19 }
  0x1a   :  { %185 = vrot.lane.b32.xlu1 %v1597_v3, %s1523_s20  ;;  %183 = vrot.lane.b32.xlu0 %v1583_v1, %s1523_s20 }
  0x1e   :  { %216 = vrot.lane.b32.xlu1 %v1583_v1, %s1524_s21  ;;  %181 = vrot.lane.b32.xlu0 %v1578_v0, %s1523_s20 }
  0x22   :  { %249 = vrot.lane.b32.xlu1 %v1583_v1, %s1525_s22  ;;  %218 = vrot.lane.b32.xlu0 %v1597_v3, %s1524_s21 }
  0x26   :  { %214 = vrot.lane.b32.xlu1 %v1578_v0, %s1524_s21  ;;  %251 = vrot.lane.b32.xlu0 %v1597_v3, %s1525_s22 }
  0x2a   :  { %47 = vrot.lane.b32.xlu1 %v1597_v3, %s1520_s12  ;;  %247 = vrot.lane.b32.xlu0 %v1578_v0, %s1525_s22 }
  0x2e   :  { %80 = vrot.lane.b32.xlu1 %v1597_v3, %s1519_s11  ;;  %49 = vrot.lane.b32.xlu0 %v1602_v4, %s1520_s12 }
  0x32   :  { %51 = vrot.lane.b32.xlu1 %v1607_v5, %s1520_s12  ;;  %82 = vrot.lane.b32.xlu0 %v1602_v4, %s1519_s11 }
  0x36   :  { %113 = vrot.lane.b32.xlu1 %v1597_v3, %s1521_s19  ;;  %84 = vrot.lane.b32.xlu0 %v1607_v5, %s1519_s11 }
  0x3a   :  { %146 = vrot.lane.b32.xlu1 %v1597_v3, %s1522_s0  ;;  %115 = vrot.lane.b32.xlu0 %v1602_v4, %s1521_s19 }
  0x3e   :  { %282 = vrot.lane.b32.xlu1 %v1583_v1, %s1527_s23  ;;  %148 = vrot.lane.b32.xlu0 %v1602_v4, %s1522_s0 }
  0x42   :  { %280 = vrot.lane.b32.xlu1 %v1578_v0, %s1527_s23  ;;  %284 = vrot.lane.b32.xlu0 %v1597_v3, %s1527_s23 }
  0x46   :  { %150 = vrot.lane.b32.xlu1 %v1607_v5, %s1522_s0  ;;  %117 = vrot.lane.b32.xlu0 %v1607_v5, %s1521_s19 }
  0x4a   :  { %189 = vrot.lane.b32.xlu1 %v1607_v5, %s1523_s20  ;;  %187 = vrot.lane.b32.xlu0 %v1602_v4, %s1523_s20 }
  0x4e   :  { %220 = vrot.lane.b32.xlu1 %v1602_v4, %s1524_s21  ;;  %191 = vrot.lane.b32.xlu0 %v1588_v2, %s1523_s20 }
  0x52   :  { %253 = vrot.lane.b32.xlu1 %v1602_v4, %s1525_s22  ;;  %222 = vrot.lane.b32.xlu0 %v1607_v5, %s1524_s21 }
  0x56   :  { %224 = vrot.lane.b32.xlu1 %v1588_v2, %s1524_s21  ;;  %255 = vrot.lane.b32.xlu0 %v1607_v5, %s1525_s22 }
  0x5a   :  { %286 = vrot.lane.b32.xlu1 %v1602_v4, %s1527_s23  ;;  %257 = vrot.lane.b32.xlu0 %v1588_v2, %s1525_s22 }
  0x5e   :  { %290 = vrot.lane.b32.xlu1 %v1588_v2, %s1527_s23  ;;  %288 = vrot.lane.b32.xlu0 %v1607_v5, %s1527_s23 }
  0x74   :  { %v77_v7 = vpop.permute.xlu1 %76  ;;  %v44_v8 = vpop.permute.xlu0 %43 }
  0x75   :  { %101 = vst.msk [vmem:[#allocation2 + $0x30] sm:$0xff] %vm100_vm0, %v77_v7 }
  0x76   :  { %68 = vst.msk [vmem:[#allocation2] sm:$0xff] %vm67_vm1, %v44_v8 }
  0x78   :  { %v1705_v9 = vpop.permute.xlu1 %78  ;;  %v46_v10 = vpop.permute.xlu0 %45 }
  0x79   :  { %v89_v11 = vsel %vm88_vm2, %v77_v7, %v1705_v9  ;;  %v56_v12 = vsel %vm55_vm3, %v44_v8, %v46_v10 }
  0x7a   :  { %v1365_v13 = vpack.c.bf16 %v89_v11, %v56_v12 }
  0x7c   :  { %v1710_v14 = vpop.permute.xlu1 %86  ;;  %v1712_v15 = vpop.permute.xlu0 %53  ;;  %1366 = vmatprep.subr.bf16.mxu0 %v1365_v13 }
  0x7d   :  { %108 = vst.msk [vmem:[#allocation2 + $0x30] sm:$0xff] %vm88_vm2, %v1710_v14 }
  0x7e   :  { %75 = vst.msk [vmem:[#allocation2] sm:$0xff] %vm55_vm3, %v1712_v15 }
  0x80   :  { %v1718_v16 = vpop.permute.xlu1 %111  ;;  %v110_v17 = vpop.permute.xlu0 %109 }
  0x81   :  { %v122_v18 = vsel %vm121_vm4, %v110_v17, %v1718_v16  ;;  %134 = vst.msk [vmem:[#allocation2 + $0x60] sm:$0xff] %vm133_vm5, %v110_v17 }
  0x84   :  { %v1723_v19 = vpop.permute.xlu1 %144  ;;  %v143_v20 = vpop.permute.xlu0 %142  ;;  %v320_v22 = vld [vmem:[#allocation2 + $0x30] sm:$0xff] }
  0x85   :  { %v314_v21 = vld [vmem:[#allocation2] sm:$0xff]  ;;  %v155_v23 = vsel %vm154_vm6, %v143_v20, %v1723_v19  ;;  %167 = vst.msk [vmem:[#allocation2 + $0x90] sm:$0xff] %vm166_vm7, %v143_v20 }
  0x86   :  { %v1367_v24 = vpack.c.bf16 %v320_v22, %v314_v21  ;;  %v1369_v25 = vpack.c.bf16 %v155_v23, %v122_v18 }
  0x88   :  { %1368 = vmatpush1.bf16.msra.mxu0 %v1367_v24  ;;  %v1728_v26 = vpop.permute.xlu1 %152  ;;  %v1730_v27 = vpop.permute.xlu0 %119 }
  0x89   :  { %1370 = vmatprep.subr.bf16.mxu0 %v1369_v25  ;;  %174 = vst.msk [vmem:[#allocation2 + $0x90] sm:$0xff] %vm154_vm6, %v1728_v26 }
  0x8a   :  { %141 = vst.msk [vmem:[#allocation2 + $0x60] sm:$0xff] %vm121_vm4, %v1730_v27 }
  0x8c   :  { %v1736_v28 = vpop.permute.xlu1 %185  ;;  %v184_v29 = vpop.permute.xlu0 %183 }
  0x8d   :  { %v195_v30 = vsel %vm193_vm8, %v184_v29, %v1736_v28 }
  0x8e   :  { %v1373_v37 = vpack.c.bf16 %v195_v30, %v1583_v1 }
  0x90   :  { %v217_v31 = vpop.permute.xlu1 %216  ;;  %v1740_v32 = vpop.permute.xlu0 %181  ;;  %v332_v34 = vld [vmem:[#allocation2 + $0x90] sm:$0xff] }
  0x91   :  { %v326_v33 = vld [vmem:[#allocation2 + $0x60] sm:$0xff]  ;;  %v194_v35 = vsel %vm193_vm8, %v1740_v32, %v184_v29 }
  0x92   :  { %v1371_v36 = vpack.c.bf16 %v332_v34, %v326_v33  ;;  %v1375_v41 = vpack.c.bf16 %v194_v35, %v1578_v0 }
  0x94   :  { %1372 = vmatpush1.bf16.msra.mxu0 %v1371_v36  ;;  %v250_v38 = vpop.permute.xlu1 %249  ;;  %v1745_v39 = vpop.permute.xlu0 %218 }
  0x95   :  { %1374 = vmatprep.subr.bf16.mxu0 %v1373_v37  ;;  %v228_v40 = vsel %vm226_vm9, %v217_v31, %v1745_v39 }
  0x98   :  { %1376 = vmatpush1.bf16.msra.mxu0 %v1375_v41  ;;  %v1750_v42 = vpop.permute.xlu1 %214  ;;  %v1752_v43 = vpop.permute.xlu0 %251 }
  0x99   :  { %v227_v44 = vsel %vm226_vm9, %v1750_v42, %v217_v31  ;;  %v261_v45 = vsel %vm2164_vm10, %v250_v38, %v1752_v43 }
  0x9a   :  { %v1377_v46 = vpack.c.bf16 %v261_v45, %v228_v40 }
  0x9c   :  { %v48_v47 = vpop.permute.xlu1 %47  ;;  %v1758_v48 = vpop.permute.xlu0 %247  ;;  %1378 = vmatprep.subr.bf16.mxu0 %v1377_v46 }
  0x9d   :  { %v57_v49 = vsel %vm55_vm3, %v46_v10, %v48_v47  ;;  %v260_v50 = vsel %vm2164_vm10, %v1758_v48, %v250_v38 }
  0x9e   :  { %v1379_v51 = vpack.c.bf16 %v260_v50, %v227_v44 }
  0xa0   :  { %v81_v52 = vpop.permute.xlu1 %80  ;;  %v50_v53 = vpop.permute.xlu0 %49  ;;  %1380 = vmatpush1.bf16.msra.mxu0 %v1379_v51 }
  0xa1   :  { %v90_v54 = vsel %vm88_vm2, %v1705_v9, %v81_v52  ;;  %v58_v55 = vsel %vm55_vm3, %v48_v47, %v50_v53 }
  0xa2   :  { %v1383_v62 = vpack.c.bf16 %v90_v54, %v57_v49 }
  0xa4   :  { %v52_v56 = vpop.permute.xlu1 %51  ;;  %v83_v57 = vpop.permute.xlu0 %82 }
  0xa5   :  { %v59_v58 = vsel %vm55_vm3, %v50_v53, %v52_v56  ;;  %v60_v59 = vsel %vm55_vm3, %v52_v56, %v1712_v15  ;;  %v91_v60 = vsel %vm88_vm2, %v81_v52, %v83_v57 }
  0xa6   :  { %v1381_v61 = vpack.c.bf16 %v91_v60, %v58_v55 }
  0xa8   :  { %v114_v63 = vpop.permute.xlu1 %113  ;;  %v85_v0 = vpop.permute.xlu0 %84  ;;  %1382 = vmatprep.subr.bf16.mxu1 %v1381_v61 }
  0xa9   :  { %v123_v1 = vsel %vm121_vm4, %v1718_v16, %v114_v63  ;;  %v92_v7 = vsel %vm88_vm2, %v83_v57, %v85_v0  ;;  %v93_v8 = vsel %vm88_vm2, %v85_v0, %v1710_v14  ;;  %1384 = vmatpush1.bf16.msra.mxu1 %v1383_v62 }
  0xaa   :  { %v1397_v23 = vpack.c.bf16 %v93_v8, %v60_v59  ;;  %v1399_v24 = vpack.c.bf16 %v92_v7, %v59_v58  ;;  %v588_v7 = vlaneseq  ;;  %v29_v8 = vld [vmem:[%s2151_s7] sm:$0x3f] }
  0xac   :  { %v147_v9 = vpop.permute.xlu1 %146  ;;  %v116_v10 = vpop.permute.xlu0 %115 }
  0xad   :  { %v156_v11 = vsel %vm154_vm6, %v1723_v19, %v147_v9  ;;  %v124_v12 = vsel %vm121_vm4, %v114_v63, %v116_v10  ;;  %v1787_v19 = vld [vmem:[%s2150_s1] sm:$0xff] }
  0xae   :  { %v1387_v16 = vpack.c.bf16 %v156_v11, %v123_v1  ;;  %v1528_v1 = vmov 0  }
  0xaf   :  { %1471 = vset.pattern.permute.xlu0 %v1528_v1  ;;  %1472 = vset.pattern.permute.xlu1 %v1528_v1 }
  0xb0   :  { %v283_v13 = vpop.permute.xlu1 %282  ;;  %v149_v15 = vpop.permute.xlu0 %148 }
  0xb1   :  { %v157_v17 = vsel %vm154_vm6, %v147_v9, %v149_v15  ;;  %v589_v9 = vshrl.u32 %v588_v7, 7 }
  0xb2   :  { %v1385_v18 = vpack.c.bf16 %v157_v17, %v124_v12 }
  0xb3   :  { %v594_v12 = vsub.s32 1, %v589_v9 }
  0xb4   :  { %v1779_v20 = vpop.permute.xlu1 %280  ;;  %v285_v21 = vpop.permute.xlu0 %284  ;;  %1386 = vmatprep.subr.bf16.mxu1 %v1385_v18 }
  0xb5   :  { %v293_v14 = vsel %vm2162_vm11, %v1779_v20, %v283_v13  ;;  %v294_v22 = vsel %vm2162_vm11, %v283_v13, %v285_v21  ;;  %1388 = vmatpush1.bf16.msra.mxu1 %v1387_v16 }
  0xb6   :  { %388 = vmatprep.subr.mxu0 %v294_v22 }
  0xb7   :  { %389 = vmatpush1.msra.mxu0 %v293_v14 }
  0xb8   :  { %v151_v25 = vpop.permute.xlu1 %150  ;;  %v118_v29 = vpop.permute.xlu0 %117  ;;  %1398 = vmatprep.subr.bf16.mxu0 %v1397_v23  ;;  %1359 = vmatmul.mubr.msk.f32.vlgmr.msra.gmra.mrb[0].mxu0 %vm2160_vm12, %v1787_v19  ;;  %v598_v23 = vsub.s32 2, %v589_v9 }
  0xb9   :  { %v158_v30 = vsel %vm154_vm6, %v149_v15, %v151_v25  ;;  %v159_v31 = vsel %vm154_vm6, %v151_v25, %v1728_v26  ;;  %v125_v33 = vsel %vm121_vm4, %v116_v10, %v118_v29  ;;  %v126_v34 = vsel %vm121_vm4, %v118_v29, %v1730_v27  ;;  %1400 = vmatpush1.bf16.msra.mxu0 %v1399_v24 }
  0xba   :  { %v1401_v35 = vpack.c.bf16 %v159_v31, %v126_v34  ;;  %v1403_v36 = vpack.c.bf16 %v158_v30, %v125_v33  ;;  %578 = vmatprep.mubr.f32.mxu0 %v1526_v6  ;;  %v590_v10 = vsub.s32 0, %v589_v9  ;;  %v602_v24 = vsub.s32 3, %v589_v9 }
  0xbb   :  { %v606_v31 = vsub.s32 4, %v589_v9 }
  0xbc   :  { %v190_v37 = vpop.permute.xlu1 %189  ;;  %v188_v38 = vpop.permute.xlu0 %187  ;;  %1402 = vmatprep.subr.bf16.mxu0 %v1401_v35  ;;  %v610_v35 = vsub.s32 5, %v589_v9 }
  0xbd   :  { %v196_v40 = vsel %vm193_vm8, %v1736_v28, %v188_v38  ;;  %v197_v41 = vsel %vm193_vm8, %v188_v38, %v190_v37  ;;  %1404 = vmatpush1.bf16.msra.mxu0 %v1403_v36 }
  0xbe   :  { %v1389_v26 = vpack.c.bf16 %v197_v41, %v1602_v4  ;;  %v1391_v44 = vpack.c.bf16 %v196_v40, %v1597_v3 }
  0xc0   :  { %v221_v27 = vpop.permute.xlu1 %220  ;;  %v192_v45 = vpop.permute.xlu0 %191  ;;  %1390 = vmatprep.subr.bf16.mxu1 %v1389_v26 }
  0xc1   :  { %v229_v46 = vsel %vm226_vm9, %v1745_v39, %v221_v27  ;;  %v198_v47 = vsel %vm193_vm8, %v190_v37, %v192_v45  ;;  %210 = vst.msk [vmem:[#allocation2 + $0x118] sm:$0xff] %vm193_vm8, %v192_v45  ;;  %1392 = vmatpush1.bf16.msra.mxu1 %v1391_v44 }
  0xc2   :  { %213 = vst.msk [vmem:[#allocation2 + $0x118] sm:$0xff] %vm2163_vm13, %v1740_v32 }
  0xc4   :  { %v254_v28 = vpop.permute.xlu1 %253  ;;  %v223_v49 = vpop.permute.xlu0 %222 }
  0xc5   :  { %v262_v3 = vsel %vm2164_vm10, %v1752_v43, %v254_v28  ;;  %v230_v4 = vsel %vm226_vm9, %v221_v27, %v223_v49  ;;  %v1407_v43 = vpack.c.bf16 %v198_v47, %v1607_v5 }
  0xc6   :  { %v1395_v55 = vpack.c.bf16 %v262_v3, %v229_v46 }
  0xc8   :  { %v225_v50 = vpop.permute.xlu1 %224  ;;  %v256_v51 = vpop.permute.xlu0 %255 }
  0xc9   :  { %v231_v39 = vsel %vm226_vm9, %v223_v49, %v225_v50  ;;  %243 = vst.msk [vmem:[#allocation2 + $0x148] sm:$0xff] %vm226_vm9, %v225_v50  ;;  %v263_v52 = vsel %vm2164_vm10, %v254_v28, %v256_v51  ;;  %v349_v53 = vld [vmem:[#allocation2 + $0x118] sm:$0xff] }
  0xca   :  { %246 = vst.msk [vmem:[#allocation2 + $0x148] sm:$0xff] %vm2158_vm14, %v1750_v42  ;;  %v1405_v32 = vpack.c.bf16 %v349_v53, %v1588_v2  ;;  %v1393_v54 = vpack.c.bf16 %v263_v52, %v230_v4  ;;  %vm2159_vm14 = vcmask 1048424   ;;  %v586_v53 = vld [vmem:[%s2152_s3] sm:$0xff] }
  0xcc   :  { %v287_v56 = vpop.permute.xlu1 %286  ;;  %v258_v57 = vpop.permute.xlu0 %257  ;;  %1406 = vmatprep.subr.bf16.mxu0 %v1405_v32  ;;  %1394 = vmatprep.subr.bf16.mxu1 %v1393_v54  ;;  %v585_v32 = vld [vmem:[%s2153_s2] sm:$0xff] }
  0xcd   :  { %v295_v58 = vsel %vm2162_vm11, %v285_v21, %v287_v56  ;;  %v264_v59 = vsel %vm2164_vm10, %v256_v51, %v258_v57  ;;  %276 = vst.msk [vmem:[#allocation2 + $0x178] sm:$0xff] %vm2164_vm10, %v258_v57  ;;  %1408 = vmatpush1.bf16.msra.mxu0 %v1407_v43  ;;  %1396 = vmatpush1.bf16.msra.mxu1 %v1395_v55 }
  0xce   :  { %279 = vst.msk [vmem:[#allocation2 + $0x178] sm:$0xff] %vm2161_vm15, %v1758_v48  ;;  %v1411_v63 = vpack.c.bf16 %v264_v59, %v231_v39 }
  0xd0   :  { %v291_v2 = vpop.permute.xlu1 %290  ;;  %v289_v42 = vpop.permute.xlu0 %288 }
  0xd1   :  { %309 = vst.msk [vmem:[#allocation2 + $0x1a8] sm:$0xff] %vm2162_vm11, %v291_v2  ;;  %v296_v5 = vsel %vm2162_vm11, %v287_v56, %v289_v42  ;;  %v297_v60 = vsel %vm2162_vm11, %v289_v42, %v291_v2  ;;  %v355_v61 = vld [vmem:[#allocation2 + $0x148] sm:$0xff] }
  0xd2   :  { %312 = vst.msk [vmem:[#allocation2 + $0x1a8] sm:$0xff] %vm2159_vm14, %v1779_v20  ;;  %459 = vmatprep.subr.mxu1 %v296_v5  ;;  %vm30_vm14 = vcmp.gt.f32.partialorder %v29_v8, 0.5 }
  0xd3   :  { %460 = vmatpush1.msra.mxu1 %v295_v58  ;;  %v587_v11 = vsel %vm30_vm14, 1, %v1528_v1 }
  0xd4   :  { %1360 = vmatmul.mubr.msk.f32.vlgmr.msra.gmra.mrb[0].mxu1 %vm2160_vm12, %v1787_v19  ;;  %v1838_v13 = vrot.slane %v587_v11, %v590_v10  ;;  %v1840_v15 = vrot.slane %v587_v11, %v594_v12  ;;  %v1854_v25 = vrot.slane %v587_v11, %v598_v23  ;;  %v1856_v29 = vrot.slane %v587_v11, %v602_v24 }
  0xd5   :  { %v361_v62 = vld [vmem:[#allocation2 + $0x178] sm:$0xff]  ;;  %1102 = vmatprep.mubr.f32.mxu1 %v1526_v6  ;;  %v1864_v44 = vrot.slane %v587_v11, %v606_v31  ;;  %v1866_v27 = vrot.slane %v587_v11, %v610_v35 }
  0xd6   :  { %v1409_v48 = vpack.c.bf16 %v361_v62, %v355_v61  ;;  %vm613_vm15 = vcmp.eq.s32.totalorder %v1840_v15, 1  ;;  %vm614_vm14 = vcmp.eq.s32.totalorder %v1854_v25, 1  ;;  %vm615_vm11 = vcmp.eq.s32.totalorder %v1856_v29, 1  ;;  %v1252_v29 = vld [vmem:[%s2155_s6] sm:$0xff] }
  0xd7   :  { %vm2165_vm13 = vcmp.eq.s32.totalorder %v1864_v44, 1  ;;  %vm617_vm10 = vcmp.eq.s32.totalorder %v1866_v27, 1 }
  0xd8   :  { %1410 = vmatprep.subr.bf16.mxu0 %v1409_v48 }
  0xd9   :  { %1412 = vmatpush1.bf16.msra.mxu0 %v1411_v63  ;;  %v367_v0 = vld [vmem:[#allocation2 + $0x1a8] sm:$0xff] }
  0xda   :  { %530 = vmatprep.subr.mxu0 %v367_v0 }
  0xdd   :  { %531 = vmatpush1.msra.mxu0 %v297_v60 }
  0xde   :  { %1361 = vmatmul.mubr.msk.f32.vlgmr.msra.gmra.mrb[2].mxu0 %vm2160_vm12, %v1787_v19  ;;  %vm612_vm12 = vcmp.eq.s32.totalorder %v1838_v13, 1 }
  0xdf   :  { %1173 = vmatprep.mubr.f32.mxu0 %v1526_v6 }
 0x18b   :  { %v1844_v17 = vpop.f32.mrb[0].mxu0 }
 0x18c   :  { %v618_v18 = vsel %vm612_vm12, %v1844_v17, 0.0  ;;  %v1849_v16 = vpop.f32.mrb[1].mxu0 }
 0x18d   :  { %v631_v20 = vmul.f32 %v618_v18, %v618_v18  ;;  %v619_v21 = vsel %vm613_vm15, %v1849_v16, 0.0 }
 0x18e   :  { %v624_v14 = vadd.f32 %v619_v21, %v618_v18  ;;  %v632_v22 = vmul.f32 %v619_v21, %v619_v21 }
 0x190   :  { %v637_v19 = vadd.f32 %v632_v22, %v631_v20 }
 0x1a7   :  { %v509_v30 = vpop.f32.mrb[0].mxu1 }
 0x1a8   :  { %v620_v33 = vsel %vm614_vm14, %v509_v30, 0.0  ;;  %v511_v34 = vpop.f32.mrb[1].mxu1 }
 0x1a9   :  { %v625_v36 = vadd.f32 %v624_v14, %v620_v33  ;;  %v633_v37 = vmul.f32 %v620_v33, %v620_v33  ;;  %v621_v38 = vsel %vm615_vm11, %v511_v34, 0.0 }
 0x1aa   :  { %v634_v40 = vmul.f32 %v621_v38, %v621_v38 }
 0x1ab   :  { %v638_v41 = vadd.f32 %v637_v19, %v633_v37  ;;  %v626_v26 = vadd.f32 %v625_v36, %v621_v38 }
 0x1ad   :  { %v639_v45 = vadd.f32 %v638_v41, %v634_v40 }
 0x1b1   :  { %v580_v46 = vpop.f32.mrb[2].mxu0 }
 0x1b2   :  { %v622_v47 = vsel %vm2165_vm13, %v580_v46, 0.0  ;;  %v582_v28 = vpop.f32.mrb[3].mxu0 }
 0x1b3   :  { %v627_v49 = vadd.f32 %v626_v26, %v622_v47  ;;  %v635_v3 = vmul.f32 %v622_v47, %v622_v47  ;;  %v623_v4 = vsel %vm617_vm10, %v582_v28, 0.0 }
 0x1b4   :  { %v636_v50 = vmul.f32 %v623_v4, %v623_v4 }
 0x1b5   :  { %v628_v51 = vadd.f32 %v627_v49, %v623_v4  ;;  %v640_v39 = vadd.f32 %v639_v45, %v635_v3 }
 0x1b7   :  { %629 = vadd.xlane.f32.xlu0 %v628_v51  ;;  %v641_v52 = vadd.f32 %v640_v39, %v636_v50 }
 0x1b9   :  { %642 = vadd.xlane.f32.xlu1 %v641_v52 }
 0x1ca   :  { %675 = vperm.xlu1 %1472, %v586_v53  }
 0x1cd   :  { %664 = vperm.xlu0 %1471, %v585_v32  }
 0x244   :  { %v630_v54 = vpop.xlane.xlu0 %629 }
 0x245   :  { %v644_v43 = vmul.f32 0.001953125, %v630_v54 }
 0x246   :  { %v643_v55 = vpop.xlane.xlu1 %642 }
 0x247   :  { %v645_v56 = vmul.f32 0.001953125, %v643_v55  ;;  %v646_v57 = vmul.f32 %v644_v43, %v644_v43  ;;  %v648_v2 = vsub.f32 %v1844_v17, %v644_v43  ;;  %v649_v42 = vsub.f32 %v1849_v16, %v644_v43 }
 0x248   :  { %v650_v5 = vsub.f32 %v509_v30, %v644_v43  ;;  %v651_v60 = vsub.f32 %v511_v34, %v644_v43  ;;  %v652_v62 = vsub.f32 %v580_v46, %v644_v43  ;;  %v653_v48 = vsub.f32 %v582_v28, %v644_v43 }
 0x249   :  { %v647_v58 = vsub.f32 %v645_v56, %v646_v57 }
 0x24a   :  { %v676_v11 = vpop.permute.xlu1 %675 }
 0x24b   :  { %v654_v59 = vadd.f32 1e-05, %v647_v58 }
 0x24c   :  { %v665_v63 = vpop.permute.xlu0 %664 }
 0x24d   :  { %1473 = vrsqrt.f32 %v654_v59 }
 0x257   :  { %v1474_v61 = vpop.eup %1473 }
 0x258   :  { %v656_v0 = vmul.f32 %v1474_v61, %v648_v2  ;;  %v657_v1 = vmul.f32 %v1474_v61, %v649_v42  ;;  %v658_v7 = vmul.f32 %v1474_v61, %v650_v5  ;;  %v659_v8 = vmul.f32 %v1474_v61, %v651_v60 }
 0x259   :  { %v660_v9 = vmul.f32 %v1474_v61, %v652_v62  ;;  %v661_v10 = vmul.f32 %v1474_v61, %v653_v48 }
 0x25a   :  { %v667_v12 = vmul.f32 %v665_v63, %v656_v0  ;;  %v668_v18 = vmul.f32 %v665_v63, %v657_v1  ;;  %v669_v20 = vmul.f32 %v665_v63, %v658_v7  ;;  %v670_v21 = vmul.f32 %v665_v63, %v659_v8 }
 0x25b   :  { %v671_v17 = vmul.f32 %v665_v63, %v660_v9  ;;  %v672_v14 = vmul.f32 %v665_v63, %v661_v10 }
 0x25c   :  { %v678_v16 = vadd.f32 %v676_v11, %v667_v12  ;;  %v679_v22 = vadd.f32 %v676_v11, %v668_v18  ;;  %v680_v19 = vadd.f32 %v676_v11, %v669_v20  ;;  %v681_v23 = vadd.f32 %v676_v11, %v670_v21 }
 0x25d   :  { %v682_v24 = vadd.f32 %v676_v11, %v671_v17  ;;  %v683_v30 = vadd.f32 %v676_v11, %v672_v14 }
 0x25e   :  { %v690_v31 = vmul.f32 0.70710677, %v678_v16  ;;  %v691_v33 = vmul.f32 0.70710677, %v679_v22  ;;  %v692_v34 = vmul.f32 0.70710677, %v680_v19 }
 0x25f   :  { %v693_v35 = vmul.f32 0.70710677, %v681_v23  ;;  %v694_v36 = vmul.f32 0.70710677, %v682_v24  ;;  %v695_v37 = vmul.f32 0.70710677, %v683_v30 }
 0x260   :  { %1475 = verf.f32 %v690_v31  ;;  %v684_v41 = vmul.f32 0.5, %v678_v16  ;;  %v685_v46 = vmul.f32 0.5, %v679_v22  ;;  %v686_v49 = vmul.f32 0.5, %v680_v19 }
 0x261   :  { %1477 = verf.f32 %v691_v33  ;;  %v687_v51 = vmul.f32 0.5, %v681_v23  ;;  %v688_v32 = vmul.f32 0.5, %v682_v24  ;;  %v689_v56 = vmul.f32 0.5, %v683_v30 }
 0x262   :  { %1479 = verf.f32 %v692_v34 }
 0x263   :  { %1481 = verf.f32 %v693_v35 }
 0x264   :  { %1483 = verf.f32 %v694_v36 }
 0x265   :  { %1485 = verf.f32 %v695_v37 }
 0x26a   :  { %v1476_v38 = vpop.eup %1475 }
 0x26b   :  { %v1478_v40 = vpop.eup %1477  ;;  %v702_v26 = vadd.f32 1.0, %v1476_v38 }
 0x26c   :  { %v1480_v45 = vpop.eup %1479  ;;  %v703_v47 = vadd.f32 1.0, %v1478_v40 }
 0x26d   :  { %v1482_v28 = vpop.eup %1481  ;;  %v704_v3 = vadd.f32 1.0, %v1480_v45  ;;  %v1882_v4 = vmul.f32 %v702_v26, %v684_v41 }
 0x26e   :  { %v1484_v50 = vpop.eup %1483  ;;  %v705_v39 = vadd.f32 1.0, %v1482_v28  ;;  %v1884_v52 = vmul.f32 %v703_v47, %v685_v46 }
 0x26f   :  { %v1486_v53 = vpop.eup %1485  ;;  %v706_v54 = vadd.f32 1.0, %v1484_v50  ;;  %v1886_v43 = vmul.f32 %v704_v3, %v686_v49  ;;  %v714_v55 = vsel %vm612_vm12, %v1882_v4, 0.0 }
 0x270   :  { %v707_v57 = vadd.f32 1.0, %v1486_v53  ;;  %v1891_v58 = vmul.f32 %v705_v39, %v687_v51  ;;  %v715_v59 = vsel %vm613_vm15, %v1884_v52, 0.0  ;;  %788 = vrot.lane.b32.xlu0 %v714_v55, %s1521_s19  ;;  %726 = vrot.lane.b32.xlu1 %v714_v55, %s1520_s12 }
 0x271   :  { %v1898_v2 = vmul.f32 %v706_v54, %v688_v32  ;;  %v716_v42 = vsel %vm614_vm14, %v1886_v43, 0.0 }
 0x272   :  { %v1903_v5 = vmul.f32 %v707_v57, %v689_v56  ;;  %v717_v60 = vsel %vm615_vm11, %v1891_v58, 0.0 }
 0x273   :  { %v718_v61 = vsel %vm2165_vm13, %v1898_v2, 0.0 }
 0x274   :  { %v719_v62 = vsel %vm617_vm10, %v1903_v5, 0.0  ;;  %819 = vrot.lane.b32.xlu0 %v714_v55, %s1522_s0  ;;  %728 = vrot.lane.b32.xlu1 %v715_v59, %s1520_s12 }
 0x278   :  { %798 = vrot.lane.b32.xlu0 %v719_v62, %s1521_s19  ;;  %757 = vrot.lane.b32.xlu1 %v714_v55, %s1519_s11 }
 0x27c   :  { %858 = vrot.lane.b32.xlu0 %v715_v59, %s1523_s20  ;;  %759 = vrot.lane.b32.xlu1 %v715_v59, %s1519_s11 }
 0x280   :  { %856 = vrot.lane.b32.xlu0 %v714_v55, %s1523_s20  ;;  %736 = vrot.lane.b32.xlu1 %v719_v62, %s1520_s12 }
 0x284   :  { %891 = vrot.lane.b32.xlu0 %v716_v42, %s1524_s21  ;;  %767 = vrot.lane.b32.xlu1 %v719_v62, %s1519_s11 }
 0x288   :  { %922 = vrot.lane.b32.xlu0 %v716_v42, %s1525_s22  ;;  %790 = vrot.lane.b32.xlu1 %v715_v59, %s1521_s19 }
 0x28c   :  { %918 = vrot.lane.b32.xlu0 %v714_v55, %s1525_s22  ;;  %821 = vrot.lane.b32.xlu1 %v715_v59, %s1522_s0 }
 0x290   :  { %732 = vrot.lane.b32.xlu0 %v717_v60, %s1520_s12  ;;  %829 = vrot.lane.b32.xlu1 %v719_v62, %s1522_s0 }
 0x294   :  { %763 = vrot.lane.b32.xlu0 %v717_v60, %s1519_s11  ;;  %860 = vrot.lane.b32.xlu1 %v716_v42, %s1523_s20 }
 0x298   :  { %765 = vrot.lane.b32.xlu0 %v718_v61, %s1519_s11  ;;  %889 = vrot.lane.b32.xlu1 %v715_v59, %s1524_s21 }
 0x29c   :  { %794 = vrot.lane.b32.xlu0 %v717_v60, %s1521_s19  ;;  %920 = vrot.lane.b32.xlu1 %v715_v59, %s1525_s22 }
 0x2a0   :  { %825 = vrot.lane.b32.xlu0 %v717_v60, %s1522_s0  ;;  %887 = vrot.lane.b32.xlu1 %v714_v55, %s1524_s21 }
 0x2a4   :  { %953 = vrot.lane.b32.xlu0 %v716_v42, %s1527_s23  ;;  %730 = vrot.lane.b32.xlu1 %v716_v42, %s1520_s12 }
 0x2a8   :  { %796 = vrot.lane.b32.xlu0 %v718_v61, %s1521_s19  ;;  %761 = vrot.lane.b32.xlu1 %v716_v42, %s1519_s11 }
 0x2ac   :  { %862 = vrot.lane.b32.xlu0 %v717_v60, %s1523_s20  ;;  %734 = vrot.lane.b32.xlu1 %v718_v61, %s1520_s12 }
 0x2b0   :  { %866 = vrot.lane.b32.xlu0 %v719_v62, %s1523_s20  ;;  %792 = vrot.lane.b32.xlu1 %v716_v42, %s1521_s19 }
 0x2b4   :  { %895 = vrot.lane.b32.xlu0 %v718_v61, %s1524_s21  ;;  %823 = vrot.lane.b32.xlu1 %v716_v42, %s1522_s0 }
 0x2b8   :  { %926 = vrot.lane.b32.xlu0 %v718_v61, %s1525_s22  ;;  %951 = vrot.lane.b32.xlu1 %v715_v59, %s1527_s23 }
 0x2bc   :  { %928 = vrot.lane.b32.xlu0 %v719_v62, %s1525_s22  ;;  %949 = vrot.lane.b32.xlu1 %v714_v55, %s1527_s23 }
 0x2c0   :  { %957 = vrot.lane.b32.xlu0 %v718_v61, %s1527_s23  ;;  %827 = vrot.lane.b32.xlu1 %v718_v61, %s1522_s0 }
 0x2c4   :  { %864 = vrot.lane.b32.xlu1 %v718_v61, %s1523_s20 }
 0x2c8   :  { %893 = vrot.lane.b32.xlu1 %v717_v60, %s1524_s21 }
 0x2cc   :  { %924 = vrot.lane.b32.xlu1 %v717_v60, %s1525_s22 }
 0x2d0   :  { %897 = vrot.lane.b32.xlu1 %v719_v62, %s1524_s21 }
 0x2d4   :  { %955 = vrot.lane.b32.xlu1 %v717_v60, %s1527_s23 }
 0x2d8   :  { %959 = vrot.lane.b32.xlu1 %v719_v62, %s1527_s23 }
 0x2e2   :  { %v789_v48 = vpop.permute.xlu0 %788  ;;  %v727_v63 = vpop.permute.xlu1 %726 }
 0x2e3   :  { %811 = vst.msk [vmem:[#allocation3 + $0x60] sm:$0xff] %vm133_vm5, %v789_v48  ;;  %vm2166_vm5 = vcmask 900096  }
 0x2e4   :  { %749 = vst.msk [vmem:[#allocation3] sm:$0xff] %vm67_vm1, %v727_v63 }
 0x2e6   :  { %v820_v0 = vpop.permute.xlu0 %819  ;;  %v1962_v1 = vpop.permute.xlu1 %728 }
 0x2e7   :  { %842 = vst.msk [vmem:[#allocation3 + $0x90] sm:$0xff] %vm166_vm7, %v820_v0  ;;  %v738_v7 = vsel %vm55_vm3, %v727_v63, %v1962_v1  ;;  %vm2167_vm7 = vmmov %vm2166_vm5 }
 0x2ea   :  { %v1967_v8 = vpop.permute.xlu0 %798  ;;  %v758_v9 = vpop.permute.xlu1 %757 }
 0x2eb   :  { %818 = vst.msk [vmem:[#allocation3 + $0x60] sm:$0xff] %vm121_vm4, %v1967_v8 }
 0x2ec   :  { %780 = vst.msk [vmem:[#allocation3 + $0x30] sm:$0xff] %vm100_vm0, %v758_v9  ;;  %vm1529_vm0 = vmmov 1  }
 0x2ed   :  { %vm1501_vm1 = vmpackc.low %vm1529_vm0, %vm613_vm15 }
 0x2ee   :  { %v859_v10 = vpop.permute.xlu0 %858  ;;  %v1972_v11 = vpop.permute.xlu1 %759  ;;  %vm1504_vm13 = vmpackc.low %vm1529_vm0, %vm612_vm12 }
 0x2ef   :  { %v769_v12 = vsel %vm88_vm2, %v758_v9, %v1972_v11 }
 0x2f0   :  { %v1413_v18 = vpack.c.bf16 %v769_v12, %v738_v7 }
 0x2f2   :  { %v1976_v20 = vpop.permute.xlu0 %856  ;;  %v1978_v21 = vpop.permute.xlu1 %736  ;;  %1414 = vmatprep.subr.bf16.mxu1 %v1413_v18  ;;  %v993_v47 = vld [vmem:[#allocation3 + $0x60] sm:$0xff] }
 0x2f3   :  { %v868_v17 = vsel %vm193_vm8, %v1976_v20, %v859_v10  ;;  %756 = vst.msk [vmem:[#allocation3] sm:$0xff] %vm55_vm3, %v1978_v21 }
 0x2f4   :  { %v1505_v57 = vpack.c.bf16 %v868_v17, %v1882_v4 }
 0x2f6   :  { %v1984_v14 = vpop.permute.xlu0 %891  ;;  %v768_v16 = vpop.permute.xlu1 %767 }
 0x2f7   :  { %787 = vst.msk [vmem:[#allocation3 + $0x30] sm:$0xff] %vm88_vm2, %v768_v16 }
 0x2fa   :  { %v1987_v22 = vpop.permute.xlu0 %922  ;;  %v1989_v19 = vpop.permute.xlu1 %790  ;;  %v981_v31 = vld [vmem:[#allocation3] sm:$0xff] }
 0x2fb   :  { %v800_v23 = vsel %vm121_vm4, %v789_v48, %v1989_v19 }
 0x2fe   :  { %v1993_v24 = vpop.permute.xlu0 %918  ;;  %v1995_v30 = vpop.permute.xlu1 %821  ;;  %v987_v33 = vld [vmem:[#allocation3 + $0x30] sm:$0xff] }
 0x2ff   :  { %v831_v34 = vsel %vm154_vm6, %v820_v0, %v1995_v30  ;;  %v1415_v35 = vpack.c.bf16 %v987_v33, %v981_v31 }
 0x300   :  { %v1417_v36 = vpack.c.bf16 %v831_v34, %v800_v23 }
 0x301   :  { %1416 = vmatpush1.bf16.msra.mxu1 %v1415_v35 }
 0x302   :  { %v733_v37 = vpop.permute.xlu0 %732  ;;  %v1999_v38 = vpop.permute.xlu1 %829  ;;  %1418 = vmatprep.subr.bf16.mxu1 %v1417_v36 }
 0x303   :  { %849 = vst.msk [vmem:[#allocation3 + $0x90] sm:$0xff] %vm154_vm6, %v1999_v38 }
 0x306   :  { %v764_v40 = vpop.permute.xlu0 %763  ;;  %v861_v41 = vpop.permute.xlu1 %860 }
 0x307   :  { %v869_v26 = vsel %vm193_vm8, %v859_v10, %v861_v41 }
 0x308   :  { %v1502_v32 = vpack.c.bf16 %v869_v26, %v1884_v52 }
 0x30a   :  { %v766_v45 = vpop.permute.xlu0 %765  ;;  %v890_v46 = vpop.permute.xlu1 %889  ;;  %v999_v28 = vld [vmem:[#allocation3 + $0x90] sm:$0xff] }
 0x30b   :  { %v2005_v49 = vsel %vm88_vm2, %v764_v40, %v766_v45  ;;  %v2008_v3 = vsel %vm88_vm2, %v766_v45, %v768_v16  ;;  %v900_v50 = vsel %vm226_vm9, %v890_v46, %v1984_v14  ;;  %v1419_v51 = vpack.c.bf16 %v999_v28, %v993_v47 }
 0x30d   :  { %1420 = vmatpush1.bf16.msra.mxu1 %v1419_v51 }
 0x30e   :  { %v795_v39 = vpop.permute.xlu0 %794  ;;  %v921_v53 = vpop.permute.xlu1 %920  ;;  %1503 = vmatprep.subr.msk.bf16.mxu1 %vm1501_vm1, %v1502_v32 }
 0x30f   :  { %v930_v54 = vsel %vm2166_vm5, %v1993_v24, %v921_v53  ;;  %v931_v55 = vsel %vm2167_vm7, %v921_v53, %v1987_v22  ;;  %vm2174_vm7 = vcmask 588800  }
 0x310   :  { %v1425_v56 = vpack.c.bf16 %v931_v55, %v900_v50 }
 0x311   :  { %1506 = vmatpush1.bf16.msk.msra.mxu1 %vm1504_vm13, %v1505_v57 }
 0x312   :  { %v826_v59 = vpop.permute.xlu0 %825  ;;  %v2024_v42 = vpop.permute.xlu1 %887  ;;  %1426 = vmatprep.subr.bf16.mxu1 %v1425_v56 }
 0x313   :  { %v899_v52 = vsel %vm226_vm9, %v2024_v42, %v890_v46 }
 0x314   :  { %v1427_v60 = vpack.c.bf16 %v930_v54, %v899_v52 }
 0x316   :  { %v2028_v61 = vpop.permute.xlu0 %953  ;;  %v731_v62 = vpop.permute.xlu1 %730  ;;  %1428 = vmatpush1.bf16.msra.mxu1 %v1427_v60 }
 0x317   :  { %v739_v48 = vsel %vm55_vm3, %v1962_v1, %v731_v62  ;;  %v740_v63 = vsel %vm55_vm3, %v731_v62, %v733_v37 }
 0x31a   :  { %v797_v0 = vpop.permute.xlu0 %796  ;;  %v762_v4 = vpop.permute.xlu1 %761 }
 0x31b   :  { %v803_v7 = vsel %vm121_vm4, %v795_v39, %v797_v0  ;;  %v804_v9 = vsel %vm121_vm4, %v797_v0, %v1967_v8  ;;  %v770_v10 = vsel %vm88_vm2, %v1972_v11, %v762_v4  ;;  %v771_v12 = vsel %vm88_vm2, %v762_v4, %v764_v40 }
 0x31c   :  { %v1429_v18 = vpack.c.bf16 %v771_v12, %v740_v63  ;;  %v1431_v17 = vpack.c.bf16 %v770_v10, %v739_v48  ;;  %vm2168_vm2 = vcmask 1048568  }
 0x31e   :  { %v863_v16 = vpop.permute.xlu0 %862  ;;  %v735_v23 = vpop.permute.xlu1 %734  ;;  %1430 = vmatprep.subr.bf16.mxu0 %v1429_v18 }
 0x31f   :  { %v870_v1 = vsel %vm193_vm8, %v861_v41, %v863_v16  ;;  %v741_v31 = vsel %vm55_vm3, %v733_v37, %v735_v23  ;;  %v742_v33 = vsel %vm55_vm3, %v735_v23, %v1978_v21  ;;  %1432 = vmatpush1.bf16.msra.mxu0 %v1431_v17  ;;  %vm2169_vm3 = vcmask 891904  }
 0x320   :  { %vm2172_vm1 = vmmov %vm2169_vm3  ;;  %v1445_v51 = vpack.c.bf16 %v2008_v3, %v742_v33 }
 0x322   :  { %v867_v34 = vpop.permute.xlu0 %866  ;;  %v793_v8 = vpop.permute.xlu1 %792 }
 0x323   :  { %884 = vst.msk [vmem:[#allocation3 + $0x118] sm:$0xff] %vm193_vm8, %v867_v34  ;;  %v801_v11 = vsel %vm121_vm4, %v1989_v19, %v793_v8  ;;  %v802_v35 = vsel %vm121_vm4, %v793_v8, %v795_v39  ;;  %vm2170_vm4 = vmmov %vm2166_vm5  ;;  %vm2173_vm5 = vcmask 1048432   ;;  %v1447_v39 = vpack.c.bf16 %v2005_v49, %v741_v31 }
 0x324   :  { %886 = vst.msk [vmem:[#allocation3 + $0x118] sm:$0xff] %vm2168_vm2, %v1976_v20  ;;  %v2057_v20 = vld [vmem:[%s2154_s4] sm:$0xff]  ;;  %vm2171_vm13 = vmmov %vm2170_vm4 }
 0x325   :  { %vm1507_vm2 = vmpackc.low %vm1529_vm0, %vm617_vm10 }
 0x326   :  { %v896_v36 = vpop.permute.xlu0 %895  ;;  %v824_v40 = vpop.permute.xlu1 %823 }
 0x327   :  { %v832_v37 = vsel %vm154_vm6, %v1995_v30, %v824_v40  ;;  %v833_v21 = vsel %vm154_vm6, %v824_v40, %v826_v59 }
 0x328   :  { %v1433_v41 = vpack.c.bf16 %v833_v21, %v802_v35  ;;  %v1435_v26 = vpack.c.bf16 %v832_v37, %v801_v11 }
 0x32a   :  { %v927_v45 = vpop.permute.xlu0 %926  ;;  %v952_v46 = vpop.permute.xlu1 %951  ;;  %1434 = vmatprep.subr.bf16.mxu0 %v1433_v41 }
 0x32b   :  { %v962_v19 = vsel %vm2169_vm3, %v952_v46, %v2028_v61  ;;  %1436 = vmatpush1.bf16.msra.mxu0 %v1435_v26  ;;  %v1016_v3 = vld [vmem:[#allocation3 + $0x118] sm:$0xff]  ;;  %vm2175_vm3 = vcmp.eq.s32.totalorder %v1864_v44, 1 }
 0x32c   :  { %1054 = vmatprep.subr.mxu1 %v962_v19 }
 0x32e   :  { %v929_v47 = vpop.permute.xlu0 %928  ;;  %v950_v28 = vpop.permute.xlu1 %949 }
 0x32f   :  { %v2060_v30 = vsel %vm2170_vm4, %v927_v45, %v929_v47  ;;  %946 = vst.msk [vmem:[#allocation3 + $0x178] sm:$0xff] %vm2171_vm13, %v929_v47  ;;  %v961_v50 = vsel %vm2172_vm1, %v950_v28, %v952_v46  ;;  %vm1516_vm4 = vmpackc.low %vm1529_vm0, %vm2175_vm3 }
 0x330   :  { %948 = vst.msk [vmem:[#allocation3 + $0x178] sm:$0xff] %vm2173_vm5, %v1993_v24  ;;  %1055 = vmatpush1.msra.mxu1 %v961_v50  ;;  %vm2176_vm1 = vmmov %vm2171_vm13  ;;  %vm2178_vm5 = vcmask 891904  }
 0x331   :  { %1446 = vmatprep.subr.bf16.mxu1 %v1445_v51  ;;  %1362 = vmatmul.mubr.msk.f32.vlgmr.msra.gmra.mrb[2].mxu1 %vm2174_vm7, %v2057_v20  ;;  %vm2179_vm7 = vmmov %vm2178_vm5 }
 0x332   :  { %v828_v53 = vpop.permute.xlu1 %827  ;;  %1448 = vmatpush1.bf16.msra.mxu1 %v1447_v39  ;;  %1244 = vmatprep.mubr.f32.mxu1 %v1526_v6  ;;  %v1508_v6 = vpack.c.bf16 %v1016_v3, %v1903_v5  ;;  %v1514_v5 = vpack.c.bf16 %v870_v1, %v1886_v43 }
 0x333   :  { %v834_v32 = vsel %vm154_vm6, %v826_v59, %v828_v53  ;;  %v835_v54 = vsel %vm154_vm6, %v828_v53, %v1999_v38  ;;  %vm1510_vm6 = vmpackc.low %vm1529_vm0, %vm615_vm11 }
 0x334   :  { %v1449_v55 = vpack.c.bf16 %v835_v54, %v804_v9  ;;  %v1451_v56 = vpack.c.bf16 %v834_v32, %v803_v7 }
 0x336   :  { %v865_v24 = vpop.permute.xlu1 %864  ;;  %1450 = vmatprep.subr.bf16.mxu1 %v1449_v55 }
 0x337   :  { %v871_v49 = vsel %vm193_vm8, %v863_v16, %v865_v24  ;;  %v872_v57 = vsel %vm193_vm8, %v865_v24, %v867_v34  ;;  %1452 = vmatpush1.bf16.msra.mxu1 %v1451_v56  ;;  %vm1513_vm8 = vmpackc.low %vm1529_vm0, %vm614_vm14  ;;  %vm2177_vm0 = vcmask 1048440   ;;  %v1028_v17 = vld [vmem:[#allocation3 + $0x178] sm:$0xff] }
 0x338   :  { %1509 = vmatprep.subr.msk.bf16.mxu1 %vm1507_vm2, %v1508_v6  ;;  %v1511_v38 = vpack.c.bf16 %v871_v49, %v1891_v58  ;;  %v1517_v62 = vpack.c.bf16 %v872_v57, %v1898_v2  ;;  %v958_v2 = vpop.permute.xlu0 %957  ;;  %vm2180_vm2 = vcmask 588800  }
 0x339   :  { %vm2184_vm3 = vmmov %vm2180_vm2 }
 0x33a   :  { %v894_v59 = vpop.permute.xlu1 %893  ;;  %1512 = vmatprep.subr.msk.bf16.mxu0 %vm1510_vm6, %v1511_v38  ;;  %vm2181_vm6 = vmmov %vm2178_vm5 }
 0x33b   :  { %v901_v52 = vsel %vm226_vm9, %v1984_v14, %v894_v59  ;;  %v902_v60 = vsel %vm226_vm9, %v894_v59, %v896_v36  ;;  %1515 = vmatpush1.bf16.msk.msra.mxu0 %vm1513_vm8, %v1514_v5  ;;  %1518 = vmatpush1.bf16.msk.msra.mxu1 %vm1516_vm4, %v1517_v62  ;;  %vm2183_vm8 = vcmask 1048424  }
 0x33e   :  { %v925_v58 = vpop.permute.xlu1 %924 }
 0x33f   :  { %v932_v14 = vsel %vm2171_vm13, %v1987_v22, %v925_v58  ;;  %v933_v48 = vsel %vm2176_vm1, %v925_v58, %v927_v45 }
 0x340   :  { %v1441_v63 = vpack.c.bf16 %v933_v48, %v902_v60  ;;  %v1443_v0 = vpack.c.bf16 %v932_v14, %v901_v52 }
 0x342   :  { %v898_v4 = vpop.permute.xlu1 %897  ;;  %1442 = vmatprep.subr.bf16.mxu0 %v1441_v63 }
 0x343   :  { %v903_v43 = vsel %vm226_vm9, %v896_v36, %v898_v4  ;;  %915 = vst.msk [vmem:[#allocation3 + $0x148] sm:$0xff] %vm226_vm9, %v898_v4  ;;  %1444 = vmatpush1.bf16.msra.mxu0 %v1443_v0  ;;  %vm2182_vm9 = vmmov %vm2178_vm5 }
 0x344   :  { %917 = vst.msk [vmem:[#allocation3 + $0x148] sm:$0xff] %vm2177_vm0, %v2024_v42  ;;  %v1459_v16 = vpack.c.bf16 %v2060_v30, %v903_v43 }
 0x346   :  { %v956_v7 = vpop.permute.xlu1 %955 }
 0x347   :  { %v963_v9 = vsel %vm2178_vm5, %v2028_v61, %v956_v7  ;;  %v964_v22 = vsel %vm2179_vm7, %v956_v7, %v958_v2 }
 0x348   :  { %1125 = vmatprep.subr.mxu0 %v964_v22 }
 0x349   :  { %1126 = vmatpush1.msra.mxu0 %v963_v9 }
 0x34a   :  { %v960_v10 = vpop.permute.xlu1 %959  ;;  %1363 = vmatmul.mubr.msk.f32.vlgmr.msra.gmra.mrb[4].mxu0 %vm2180_vm2, %v2057_v20 }
 0x34b   :  { %v965_v12 = vsel %vm2181_vm6, %v958_v2, %v960_v10  ;;  %977 = vst.msk [vmem:[#allocation3 + $0x1a8] sm:$0xff] %vm2182_vm9, %v960_v10  ;;  %v1022_v18 = vld [vmem:[#allocation3 + $0x148] sm:$0xff] }
 0x34c   :  { %979 = vst.msk [vmem:[#allocation3 + $0x1a8] sm:$0xff] %vm2183_vm8, %v950_v28  ;;  %v1457_v42 = vpack.c.bf16 %v1028_v17, %v1022_v18 }
 0x34e   :  { %1458 = vmatprep.subr.bf16.mxu1 %v1457_v42 }
 0x34f   :  { %1460 = vmatpush1.bf16.msra.mxu1 %v1459_v16 }
 0x353   :  { %v1034_v61 = vld [vmem:[#allocation3 + $0x1a8] sm:$0xff] }
 0x354   :  { %1196 = vmatprep.subr.mxu1 %v1034_v61 }
 0x355   :  { %1197 = vmatpush1.msra.mxu1 %v965_v12 }
 0x356   :  { %1364 = vmatmul.mubr.msk.f32.vlgmr.msra.gmra.mrb[4].mxu1 %vm2184_vm3, %v2057_v20 }
 0x404   :  { %v1104_v23 = vpop.f32.mrb[2].mxu1 }
 0x405   :  { %v1253_v1 = vsel %vm612_vm12, %v1104_v23, 0.0  ;;  %v1106_v31 = vpop.f32.mrb[3].mxu1  ;;  %vm2185_vm12 = vcmp.eq.s32.totalorder %v1864_v44, 1  ;;  %v1251_v44 = vld [vmem:[%s2156_s5] sm:$0xff] }
 0x406   :  { %v1266_v33 = vmul.f32 %v1253_v1, %v1253_v1  ;;  %v1254_v34 = vsel %vm613_vm15, %v1106_v31, 0.0 }
 0x407   :  { %v1259_v8 = vadd.f32 %v1254_v34, %v1253_v1  ;;  %v1267_v11 = vmul.f32 %v1254_v34, %v1254_v34 }
 0x409   :  { %v1272_v35 = vadd.f32 %v1267_v11, %v1266_v33 }
 0x41d   :  { %v1175_v36 = vpop.f32.mrb[4].mxu0 }
 0x41e   :  { %v1255_v40 = vsel %vm614_vm14, %v1175_v36, 0.0  ;;  %v1177_v37 = vpop.f32.mrb[5].mxu0 }
 0x41f   :  { %v1260_v21 = vadd.f32 %v1259_v8, %v1255_v40  ;;  %v1268_v41 = vmul.f32 %v1255_v40, %v1255_v40  ;;  %v1256_v26 = vsel %vm615_vm11, %v1177_v37, 0.0 }
 0x420   :  { %v1269_v13 = vmul.f32 %v1256_v26, %v1256_v26 }
 0x421   :  { %v1273_v45 = vadd.f32 %v1272_v35, %v1268_v41  ;;  %v1261_v46 = vadd.f32 %v1260_v21, %v1256_v26 }
 0x423   :  { %v1274_v19 = vadd.f32 %v1273_v45, %v1269_v13 }
 0x429   :  { %v1246_v47 = vpop.f32.mrb[4].mxu1 }
 0x42a   :  { %v1257_v15 = vsel %vm2185_vm12, %v1246_v47, 0.0  ;;  %v1248_v28 = vpop.f32.mrb[5].mxu1 }
 0x42b   :  { %v1262_v20 = vadd.f32 %v1261_v46, %v1257_v15  ;;  %v1270_v30 = vmul.f32 %v1257_v15, %v1257_v15  ;;  %v1258_v25 = vsel %vm617_vm10, %v1248_v28, 0.0 }
 0x42c   :  { %v1271_v50 = vmul.f32 %v1258_v25, %v1258_v25 }
 0x42d   :  { %v1275_v51 = vadd.f32 %v1274_v19, %v1270_v30  ;;  %v1263_v39 = vadd.f32 %v1262_v20, %v1258_v25 }
 0x42f   :  { %v1276_v53 = vadd.f32 %v1275_v51, %v1271_v50  ;;  %1264 = vadd.xlane.f32.xlu0 %v1263_v39 }
 0x431   :  { %1277 = vadd.xlane.f32.xlu1 %v1276_v53 }
 0x442   :  { %1310 = vperm.xlu1 %1472, %v1252_v29  }
 0x445   :  { %1299 = vperm.xlu0 %1471, %v1251_v44  }
 0x4bc   :  { %v1265_v32 = vpop.xlane.xlu0 %1264 }
 0x4bd   :  { %v1279_v54 = vmul.f32 0.001953125, %v1265_v32 }
 0x4be   :  { %v1278_v27 = vpop.xlane.xlu1 %1277 }
 0x4bf   :  { %v1280_v3 = vmul.f32 0.001953125, %v1278_v27  ;;  %v1281_v55 = vmul.f32 %v1279_v54, %v1279_v54  ;;  %v1283_v49 = vsub.f32 %v1104_v23, %v1279_v54  ;;  %v1284_v57 = vsub.f32 %v1106_v31, %v1279_v54 }
 0x4c0   :  { %v1285_v6 = vsub.f32 %v1175_v36, %v1279_v54  ;;  %v1286_v59 = vsub.f32 %v1177_v37, %v1279_v54  ;;  %v1287_v52 = vsub.f32 %v1246_v47, %v1279_v54  ;;  %v1288_v60 = vsub.f32 %v1248_v28, %v1279_v54 }
 0x4c1   :  { %v1282_v56 = vsub.f32 %v1280_v3, %v1281_v55 }
 0x4c2   :  { %v1311_v9 = vpop.permute.xlu1 %1310 }
 0x4c3   :  { %v1289_v24 = vadd.f32 1e-05, %v1282_v56 }
 0x4c4   :  { %v1300_v0 = vpop.permute.xlu0 %1299 }
 0x4c5   :  { %1487 = vrsqrt.f32 %v1289_v24 }
 0x4cf   :  { %v1488_v38 = vpop.eup %1487 }
 0x4d0   :  { %v1291_v5 = vmul.f32 %v1488_v38, %v1283_v49  ;;  %v1292_v62 = vmul.f32 %v1488_v38, %v1284_v57  ;;  %v1293_v58 = vmul.f32 %v1488_v38, %v1285_v6  ;;  %v1294_v14 = vmul.f32 %v1488_v38, %v1286_v59 }
 0x4d1   :  { %v1295_v48 = vmul.f32 %v1488_v38, %v1287_v52  ;;  %v1296_v63 = vmul.f32 %v1488_v38, %v1288_v60 }
 0x4d2   :  { %v1302_v4 = vmul.f32 %v1300_v0, %v1291_v5  ;;  %v1303_v43 = vmul.f32 %v1300_v0, %v1292_v62  ;;  %v1304_v2 = vmul.f32 %v1300_v0, %v1293_v58  ;;  %v1305_v7 = vmul.f32 %v1300_v0, %v1294_v14 }
 0x4d3   :  { %v1306_v22 = vmul.f32 %v1300_v0, %v1295_v48  ;;  %v1307_v10 = vmul.f32 %v1300_v0, %v1296_v63 }
 0x4d4   :  { %v1313_v12 = vadd.f32 %v1311_v9, %v1302_v4  ;;  %v1314_v18 = vadd.f32 %v1311_v9, %v1303_v43  ;;  %v1315_v17 = vadd.f32 %v1311_v9, %v1304_v2  ;;  %v1316_v42 = vadd.f32 %v1311_v9, %v1305_v7 }
 0x4d5   :  { %v1317_v16 = vadd.f32 %v1311_v9, %v1306_v22  ;;  %v1318_v61 = vadd.f32 %v1311_v9, %v1307_v10 }
 0x4d6   :  { %v1325_v23 = vmul.f32 0.70710677, %v1313_v12  ;;  %v1326_v1 = vmul.f32 0.70710677, %v1314_v18  ;;  %v1327_v31 = vmul.f32 0.70710677, %v1315_v17 }
 0x4d7   :  { %v1328_v33 = vmul.f32 0.70710677, %v1316_v42  ;;  %v1329_v34 = vmul.f32 0.70710677, %v1317_v16  ;;  %v1330_v8 = vmul.f32 0.70710677, %v1318_v61 }
 0x4d8   :  { %1489 = verf.f32 %v1325_v23  ;;  %v1319_v36 = vmul.f32 0.5, %v1313_v12  ;;  %v1320_v21 = vmul.f32 0.5, %v1314_v18  ;;  %v1321_v13 = vmul.f32 0.5, %v1315_v17 }
 0x4d9   :  { %1491 = verf.f32 %v1326_v1  ;;  %v1322_v47 = vmul.f32 0.5, %v1316_v42  ;;  %v1323_v30 = vmul.f32 0.5, %v1317_v16  ;;  %v1324_v51 = vmul.f32 0.5, %v1318_v61 }
 0x4da   :  { %1493 = verf.f32 %v1327_v31 }
 0x4db   :  { %1495 = verf.f32 %v1328_v33 }
 0x4dc   :  { %1497 = verf.f32 %v1329_v34 }
 0x4dd   :  { %1499 = verf.f32 %v1330_v8 }
 0x4e2   :  { %v1490_v11 = vpop.eup %1489 }
 0x4e3   :  { %v1492_v35 = vpop.eup %1491  ;;  %v1337_v40 = vadd.f32 1.0, %v1490_v11 }
 0x4e4   :  { %v1494_v37 = vpop.eup %1493  ;;  %v1338_v41 = vadd.f32 1.0, %v1492_v35 }
 0x4e5   :  { %v1496_v26 = vpop.eup %1495  ;;  %v1339_v45 = vadd.f32 1.0, %v1494_v37  ;;  %v1343_v46 = vmul.f32 %v1337_v40, %v1319_v36 }
 0x4e6   :  { %v1498_v19 = vpop.eup %1497  ;;  %v1340_v15 = vadd.f32 1.0, %v1496_v26  ;;  %v1344_v28 = vmul.f32 %v1338_v41, %v1320_v21 }
 0x4e7   :  { %v1500_v20 = vpop.eup %1499  ;;  %v1341_v25 = vadd.f32 1.0, %v1498_v19  ;;  %v1345_v50 = vmul.f32 %v1339_v45, %v1321_v13  ;;  %1349 = vst [vmem:[%s2157_s8] sm:$0xff] %v1343_v46 }
 0x4e8   :  { %v1342_v39 = vadd.f32 1.0, %v1500_v20  ;;  %v1346_v53 = vmul.f32 %v1340_v15, %v1322_v47  ;;  %1350 = vst [vmem:[%s2157_s8 + $0x8] sm:$0xff] %v1344_v28 }
 0x4e9   :  { %v1347_v29 = vmul.f32 %v1341_v25, %v1323_v30  ;;  %1351 = vst [vmem:[%s2157_s8 + $0x10] sm:$0xff] %v1345_v50 }
 0x4ea   :  { %v1348_v44 = vmul.f32 %v1342_v39, %v1324_v51  ;;  %1352 = vst [vmem:[%s2157_s8 + $0x18] sm:$0xff] %v1346_v53 }
 0x4eb   :  { %1353 = vst [vmem:[%s2157_s8 + $0x20] sm:$0xff] %v1347_v29 }
 0x4ec   :  { %1354 = vst [vmem:[%s2157_s8 + $0x28] sm:$0xff] %v1348_v44 }

</bundles_post_ra>
